<compile_context>
chip_gen: v5e
topology: v5e:2x2
jax: 0.10.0
libtpu: 0.0.40
codegen_flags: <defaults>
</compile_context>

<pallas_src>
import jax
import jax.numpy as jnp
from jax import lax
from jax.experimental import pallas as pl
from jax.experimental.pallas import tpu as pltpu

C_IN = 64
C_OUT = 64
KH = KW = 3
TH = 16      # output spatial rows per grid step (even, multiple of CH_H)
CH_H = 8     # spatial rows per in-kernel matmul chunk (divides TH, >= 2)
TAIL = 8     # zero-tail rows on the LHS scratch (covers the kw=1,2 shifts)


def conv_relu_kernel(x_main_ref, x_halo_ref, w_ref, o_ref, l_ref):
    """One TH-spatial-row band of 3x3 conv + ReLU.

    x_main_ref: (TH*Wp, Cin)          bf16  padded rows of this band, flattened
    x_halo_ref: (2*Wp,  Cin)          bf16  next 2 padded rows (bottom halo)
    w_ref:      (3*Cin, 3*Cout)       bf16  W3[kh*Cin+c, kw*Cout+o] = W[o,c,kh,kw]
    o_ref:      (TH*Wp, Cout)         bf16  conv+ReLU (cols >= W cropped by wrapper)
    l_ref:      (CH_H*Wp+TAIL, 3*Cin) bf16  VMEM scratch: kh-concatenated LHS
    """
    m_rows = x_main_ref.shape[0]
    wp = x_halo_ref.shape[0] // 2
    cin = x_main_ref.shape[1]
    cout = o_ref.shape[1]
    ch = CH_H * wp
    n_chunks = m_rows // ch

    # The TAIL rows only feed output rows whose spatial column is >= W (the
    # wrapper crops them), so stale data there is harmless; zero once for
    # hygiene instead of every step (scratch persists across the grid).
    @pl.when(jnp.logical_and(pl.program_id(0) == 0, pl.program_id(1) == 0))
    def _():
        l_ref[ch:ch + TAIL, :] = jnp.zeros((TAIL, l_ref.shape[1]), l_ref.dtype)

    for c in range(n_chunks):
        b = c * ch                                  # chunk start (static)
        # Assemble the kh-folded LHS:
        #   L[r, kh*Cin:(kh+1)*Cin] = window[b + r + kh*Wp],  window = main ++ halo
        # All row offsets are multiples of Wp (multiple of 8) -> sublane-aligned.
        for kh in range(KH):
            s = b + kh * wp
            col = kh * cin
            n_main = min(ch, m_rows - s)
            if n_main > 0:
                l_ref[0:n_main, col:col + cin] = x_main_ref[s:s + n_main, :]
            n_halo = ch - n_main
            if n_halo > 0:
                l_ref[n_main:ch, col:col + cin] = x_halo_ref[0:n_halo, :]

        # Single MXU pass: K = 3*Cin = 192, N = 3*Cout = 192, f32 accumulation.
        y = jnp.dot(l_ref[...], w_ref[...], preferred_element_type=jnp.float32)

        # kw epilogue: out[r] = sum_kw y[r + kw, kw-panel].  Only 3 shifted
        # adds on (ch, 64) f32 slices; no zeros init (pairwise-ish sum).
        acc = (y[0:ch, 0:cout]
               + y[1:ch + 1, cout:2 * cout]
               + y[2:ch + 2, 2 * cout:3 * cout])

        # ReLU in f32, store bf16 (halves the output HBM stream / buffers).
        o_ref[b:b + ch, :] = jnp.maximum(acc, 0.0).astype(o_ref.dtype)


def _vmem_limit_bytes(wp):
    """Scoped-VMEM budget for the chosen tiling, with headroom."""
    m = TH * wp
    ch = CH_H * wp
    budget = (
        2 * m * C_IN * 2                       # main input block, 2x buffered bf16
        + 2 * 2 * wp * C_IN * 2                # halo block, 2x buffered bf16
        + 2 * (KH * C_IN) * (KW * C_OUT) * 2   # resident weight (x2 slack)
        + 2 * m * C_OUT * 2                    # output block, 2x buffered bf16
        + (ch + TAIL) * KH * C_IN * 2          # LHS scratch bf16
        + (ch + TAIL) * KW * C_OUT * 4         # f32 matmul intermediate
        + 2 * ch * C_OUT * 4                   # f32 epilogue accumulator (x2 slack)
    )
    return int(min(max(budget * 3 // 2, 32 * 2**20), 64 * 2**20))


def conv_relu_block(x_nchw, weight_oihw):
    """Equivalent of conv_Relu_Block.forward (bf16 compute, f32 in/out).

    x_nchw:      (N, 64, H, W)  float32
    weight_oihw: (64, 64, 3, 3) float32 (PyTorch OIHW layout)
    returns:     (N, 64, H, W)  float32
    """
    N, C, H, W = x_nchw.shape
    assert C == C_IN
    assert TH % CH_H == 0 and TH % 2 == 0 and CH_H >= 2

    n_h = -(-H // TH)                   # number of row tiles
    Ht = n_h * TH                       # H rounded up to the tile height
    Wp = ((W + 2 + 7) // 8) * 8         # padded width, multiple of 8
    Hp = Ht + 2                         # padded height

    # NCHW -> NHWC, zero-pad (conv halo + rounding), bf16, flatten spatial.
    x_nhwc = jnp.transpose(x_nchw, (0, 2, 3, 1))
    x_pad = jnp.pad(x_nhwc, ((0, 0), (1, Hp - H - 1), (1, Wp - W - 1), (0, 0)))
    x_flat = x_pad.astype(jnp.bfloat16).reshape(N, Hp * Wp, C_IN)

    # (Cout, Cin, kh, kw) -> (kh, Cin, kw, Cout) -> (3*Cin, 3*Cout), bf16.
    w3 = jnp.transpose(weight_oihw, (2, 1, 3, 0)).reshape(
        KH * C_IN, KW * C_OUT).astype(jnp.bfloat16)

    out_flat = pl.pallas_call(
        conv_relu_kernel,
        out_shape=jax.ShapeDtypeStruct((N, Ht * Wp, C_OUT), jnp.bfloat16),
        grid_spec=pltpu.PrefetchScalarGridSpec(
            num_scalar_prefetch=0,
            grid=(N, n_h),
            in_specs=[
                # TH padded spatial rows for this tile (flattened).
                pl.BlockSpec((None, TH * Wp, C_IN), lambda n, i: (n, i, 0)),
                # 2-row bottom halo: element start (i+1)*TH*Wp, expressed in
                # units of 2*Wp-sized blocks.
                pl.BlockSpec((None, 2 * Wp, C_IN),
                             lambda n, i: (n, (i + 1) * (TH // 2), 0)),
                # kh/kw-folded weight, resident in VMEM across the grid.
                pl.BlockSpec((KH * C_IN, KW * C_OUT), lambda n, i: (0, 0)),
            ],
            out_specs=pl.BlockSpec((None, TH * Wp, C_OUT),
                                   lambda n, i: (n, i, 0)),
            scratch_shapes=[
                pltpu.VMEM((CH_H * Wp + TAIL, KH * C_IN), jnp.bfloat16),
            ],
        ),
        compiler_params=pltpu.CompilerParams(
            dimension_semantics=("parallel", "parallel"),
            vmem_limit_bytes=_vmem_limit_bytes(Wp)),
    )(x_flat, x_flat, w3)

    # (N, Ht*Wp, Cout) -> (N, Ht, Wp, Cout) [free] -> crop -> NCHW, f32.
    out = out_flat.reshape(N, Ht, Wp, C_OUT)[:, :H, :W, :]
    return jnp.transpose(out, (0, 3, 1, 2)).astype(jnp.float32)


if __name__ == "__main__":
    key = jax.random.PRNGKey(0)
    k_x, k_w = jax.random.split(key)

    # Channels are fixed at 64 by the module; batch=2, spatial=16.
    N, H, W = 2, 16, 16
    x = jax.random.normal(k_x, (N, C_IN, H, W), dtype=jnp.float32)

    # Deterministic VDSR-style init: N(0, sqrt(2/n)), n = kh*kw*Cout.
    std = (2.0 / (KH * KW * C_OUT)) ** 0.5
    weight = std * jax.random.normal(k_w, (C_OUT, C_IN, KH, KW),
                                     dtype=jnp.float32)

    out = jax.block_until_ready(conv_relu_block(x, weight))
    assert out.shape == (N, C_OUT, H, W)
    assert out.dtype == jnp.float32

    def ref_conv_relu(xx, ww):
        y = lax.conv_general_dilated(
            xx, ww, window_strides=(1, 1), padding=((1, 1), (1, 1)),
            dimension_numbers=("NCHW", "OIHW", "NCHW"),
            precision=lax.Precision.HIGHEST)
        return jnp.maximum(y, 0.0)

    # Tight check vs. a reference evaluated on the same bf16-rounded operands:
    # remaining error is f32 accumulation order + the bf16 output rounding.
    x_bf = x.astype(jnp.bfloat16).astype(jnp.float32)
    w_bf = weight.astype(jnp.bfloat16).astype(jnp.float32)
    ref_bf = ref_conv_relu(x_bf, w_bf)
    assert jnp.allclose(out, ref_bf, atol=1e-2, rtol=1e-2), "mismatch (bf16 ref)"

    # Sanity bound vs. the full-f32 reference (covers operand rounding too).
    ref = ref_conv_relu(x, weight)
    assert jnp.allclose(out, ref, atol=5e-2, rtol=5e-2), "mismatch (f32 ref)"

    print("KERNEL_OK")
</pallas_src>

<mosaic_0001>
module attributes {stable_mosaic.version = 11 : i64} {
  func.func @conv_relu_kernel(%arg0: i32, %arg1: i32, %arg2: memref<1x384x64xbf16, #tpu.memory_space<vmem>>, %arg3: memref<1x48x64xbf16, #tpu.memory_space<vmem>>, %arg4: memref<192x192xbf16, #tpu.memory_space<vmem>>, %arg5: memref<1x384x64xbf16, #tpu.memory_space<vmem>>, %arg6: memref<200x192xbf16, #tpu.memory_space<vmem>>) attributes {dimension_semantics = [#tpu.dimension_semantics<parallel>, #tpu.dimension_semantics<parallel>], iteration_bounds = array<i64: 2, 1>, scalar_prefetch = 0 : i64, scratch_operands = 1 : i64, tpu.core_type = #tpu.core_type<tc>, window_params = [{transform_indices = @transform_0, window_bounds = array<i64: 1, 384, 64>}, {transform_indices = @transform_1, window_bounds = array<i64: 1, 48, 64>}, {pipeline_mode = #tpu.pipeline_mode<synchronous>, transform_indices = @transform_2, window_bounds = array<i64: 192, 192>}, {transform_indices = @transform_3, window_bounds = array<i64: 1, 384, 64>}]} {
    %c0_i32 = arith.constant 0 : i32
    %0 = arith.cmpi eq, %arg0, %c0_i32 : i32
    %c0_i32_0 = arith.constant 0 : i32
    %1 = arith.cmpi eq, %arg1, %c0_i32_0 : i32
    %2 = arith.andi %0, %1 : i1
    %3 = arith.extui %2 : i1 to i32
    %c0_i32_1 = arith.constant 0 : i32
    %4 = arith.cmpi ne, %3, %c0_i32_1 : i32
    scf.if %4 {
      %cst_49 = arith.constant 0.000000e+00 : bf16
      %57 = vector.broadcast %cst_49 : bf16 to vector<8x192xbf16>
      %c192_50 = arith.constant 192 : index
      %c0_51 = arith.constant 0 : index
      %58 = vector.load %arg6[%c192_50, %c0_51] : memref<200x192xbf16, #tpu.memory_space<vmem>>, vector<8x192xbf16>
      tpu.vector_store %arg6[%c192_50, %c0_51], %57 {strides = array<i32>} : memref<200x192xbf16, #tpu.memory_space<vmem>>, vector<8x192xbf16>,
    } else {
    }
    %c0 = arith.constant 0 : index
    %c0_2 = arith.constant 0 : index
    %c0_3 = arith.constant 0 : index
    %5 = vector.load %arg2[%c0, %c0_2, %c0_3] : memref<1x384x64xbf16, #tpu.memory_space<vmem>>, vector<1x192x64xbf16>
    %6 = vector.shape_cast %5 : vector<1x192x64xbf16> to vector<192x64xbf16>
    %c0_4 = arith.constant 0 : index
    %c0_5 = arith.constant 0 : index
    %7 = vector.load %arg6[%c0_4, %c0_5] : memref<200x192xbf16, #tpu.memory_space<vmem>>, vector<192x64xbf16>
    tpu.vector_store %arg6[%c0_4, %c0_5], %6 {strides = array<i32>} : memref<200x192xbf16, #tpu.memory_space<vmem>>, vector<192x64xbf16>,
    %c0_6 = arith.constant 0 : index
    %c24 = arith.constant 24 : index
    %c0_7 = arith.constant 0 : index
    %8 = vector.load %arg2[%c0_6, %c24, %c0_7] : memref<1x384x64xbf16, #tpu.memory_space<vmem>>, vector<1x192x64xbf16>
    %9 = vector.shape_cast %8 : vector<1x192x64xbf16> to vector<192x64xbf16>
    %c0_8 = arith.constant 0 : index
    %c64 = arith.constant 64 : index
    %10 = vector.load %arg6[%c0_8, %c64] : memref<200x192xbf16, #tpu.memory_space<vmem>>, vector<192x64xbf16>
    tpu.vector_store %arg6[%c0_8, %c64], %9 {strides = array<i32>} : memref<200x192xbf16, #tpu.memory_space<vmem>>, vector<192x64xbf16>,
    %c0_9 = arith.constant 0 : index
    %c48 = arith.constant 48 : index
    %c0_10 = arith.constant 0 : index
    %11 = vector.load %arg2[%c0_9, %c48, %c0_10] : memref<1x384x64xbf16, #tpu.memory_space<vmem>>, vector<1x192x64xbf16>
    %12 = vector.shape_cast %11 : vector<1x192x64xbf16> to vector<192x64xbf16>
    %c0_11 = arith.constant 0 : index
    %c128 = arith.constant 128 : index
    %13 = vector.load %arg6[%c0_11, %c128] : memref<200x192xbf16, #tpu.memory_space<vmem>>, vector<192x64xbf16>
    tpu.vector_store %arg6[%c0_11, %c128], %12 {strides = array<i32>} : memref<200x192xbf16, #tpu.memory_space<vmem>>, vector<192x64xbf16>,
    %c0_12 = arith.constant 0 : index
    %c0_13 = arith.constant 0 : index
    %14 = vector.load %arg6[%c0_12, %c0_13] : memref<200x192xbf16, #tpu.memory_space<vmem>>, vector<200x192xbf16>
    %c0_14 = arith.constant 0 : index
    %c0_15 = arith.constant 0 : index
    %15 = vector.load %arg4[%c0_14, %c0_15] : memref<192x192xbf16, #tpu.memory_space<vmem>>, vector<192x192xbf16>
    %cst = arith.constant dense<0.000000e+00> : vector<200x192xf32>
    %16 = tpu.matmul %14, %15, %cst {dimension_numbers = #tpu.dot_dimension_numbers<[1], [0], [0], [1], [0, 0, 1, 1], [], []>} : vector<200x192xbf16>, vector<192x192xbf16>, vector<200x192xf32> -> vector<200x192xf32>
    %17 = vector.extract_strided_slice %16 {offsets = [0, 0], sizes = [192, 64], strides = [1, 1]} : vector<200x192xf32> to vector<192x64xf32>
    %18 = vector.extract_strided_slice %16 {offsets = [1, 64], sizes = [192, 64], strides = [1, 1]} : vector<200x192xf32> to vector<192x64xf32>
    %19 = arith.addf %17, %18 : vector<192x64xf32>
    %20 = vector.extract_strided_slice %16 {offsets = [2, 128], sizes = [192, 64], strides = [1, 1]} : vector<200x192xf32> to vector<192x64xf32>
    %21 = arith.addf %19, %20 : vector<192x64xf32>
    %cst_16 = arith.constant 0.000000e+00 : f32
    %22 = vector.broadcast %cst_16 : f32 to vector<192x64xf32>
    %23 = arith.maximumf %21, %22 : vector<192x64xf32>
    %24 = arith.truncf %23 : vector<192x64xf32> to vector<192x64xbf16>
    %c0_17 = arith.constant 0 : index
    %c0_18 = arith.constant 0 : index
    %c0_19 = arith.constant 0 : index
    %25 = vector.load %arg5[%c0_17, %c0_18, %c0_19] : memref<1x384x64xbf16, #tpu.memory_space<vmem>>, vector<1x192x64xbf16>
    %26 = vector.shape_cast %25 : vector<1x192x64xbf16> to vector<192x64xbf16>
    %27 = vector.shape_cast %24 : vector<192x64xbf16> to vector<1x192x64xbf16>
    tpu.vector_store %arg5[%c0_17, %c0_18, %c0_19], %27 {strides = array<i32>} : memref<1x384x64xbf16, #tpu.memory_space<vmem>>, vector<1x192x64xbf16>,
    %c0_20 = arith.constant 0 : index
    %c192 = arith.constant 192 : index
    %c0_21 = arith.constant 0 : index
    %28 = vector.load %arg2[%c0_20, %c192, %c0_21] : memref<1x384x64xbf16, #tpu.memory_space<vmem>>, vector<1x192x64xbf16>
    %29 = vector.shape_cast %28 : vector<1x192x64xbf16> to vector<192x64xbf16>
    %c0_22 = arith.constant 0 : index
    %c0_23 = arith.constant 0 : index
    %30 = vector.load %arg6[%c0_22, %c0_23] : memref<200x192xbf16, #tpu.memory_space<vmem>>, vector<192x64xbf16>
    tpu.vector_store %arg6[%c0_22, %c0_23], %29 {strides = array<i32>} : memref<200x192xbf16, #tpu.memory_space<vmem>>, vector<192x64xbf16>,
    %c0_24 = arith.constant 0 : index
    %c216 = arith.constant 216 : index
    %c0_25 = arith.constant 0 : index
    %31 = vector.load %arg2[%c0_24, %c216, %c0_25] : memref<1x384x64xbf16, #tpu.memory_space<vmem>>, vector<1x168x64xbf16>
    %32 = vector.shape_cast %31 : vector<1x168x64xbf16> to vector<168x64xbf16>
    %c0_26 = arith.constant 0 : index
    %c64_27 = arith.constant 64 : index
    %33 = vector.load %arg6[%c0_26, %c64_27] : memref<200x192xbf16, #tpu.memory_space<vmem>>, vector<168x64xbf16>
    tpu.vector_store %arg6[%c0_26, %c64_27], %32 {strides = array<i32>} : memref<200x192xbf16, #tpu.memory_space<vmem>>, vector<168x64xbf16>,
    %c0_28 = arith.constant 0 : index
    %c0_29 = arith.constant 0 : index
    %c0_30 = arith.constant 0 : index
    %34 = vector.load %arg3[%c0_28, %c0_29, %c0_30] : memref<1x48x64xbf16, #tpu.memory_space<vmem>>, vector<1x24x64xbf16>
    %35 = vector.shape_cast %34 : vector<1x24x64xbf16> to vector<24x64xbf16>
    %c168 = arith.constant 168 : index
    %c64_31 = arith.constant 64 : index
    %36 = vector.load %arg6[%c168, %c64_31] : memref<200x192xbf16, #tpu.memory_space<vmem>>, vector<24x64xbf16>
    tpu.vector_store %arg6[%c168, %c64_31], %35 {strides = array<i32>} : memref<200x192xbf16, #tpu.memory_space<vmem>>, vector<24x64xbf16>,
    %c0_32 = arith.constant 0 : index
    %c240 = arith.constant 240 : index
    %c0_33 = arith.constant 0 : index
    %37 = vector.load %arg2[%c0_32, %c240, %c0_33] : memref<1x384x64xbf16, #tpu.memory_space<vmem>>, vector<1x144x64xbf16>
    %38 = vector.shape_cast %37 : vector<1x144x64xbf16> to vector<144x64xbf16>
    %c0_34 = arith.constant 0 : index
    %c128_35 = arith.constant 128 : index
    %39 = vector.load %arg6[%c0_34, %c128_35] : memref<200x192xbf16, #tpu.memory_space<vmem>>, vector<144x64xbf16>
    tpu.vector_store %arg6[%c0_34, %c128_35], %38 {strides = array<i32>} : memref<200x192xbf16, #tpu.memory_space<vmem>>, vector<144x64xbf16>,
    %c0_36 = arith.constant 0 : index
    %c0_37 = arith.constant 0 : index
    %c0_38 = arith.constant 0 : index
    %40 = vector.load %arg3[%c0_36, %c0_37, %c0_38] : memref<1x48x64xbf16, #tpu.memory_space<vmem>>, vector<1x48x64xbf16>
    %41 = vector.shape_cast %40 : vector<1x48x64xbf16> to vector<48x64xbf16>
    %c144 = arith.constant 144 : index
    %c128_39 = arith.constant 128 : index
    %42 = vector.load %arg6[%c144, %c128_39] : memref<200x192xbf16, #tpu.memory_space<vmem>>, vector<48x64xbf16>
    tpu.vector_store %arg6[%c144, %c128_39], %41 {strides = array<i32>} : memref<200x192xbf16, #tpu.memory_space<vmem>>, vector<48x64xbf16>,
    %c0_40 = arith.constant 0 : index
    %c0_41 = arith.constant 0 : index
    %43 = vector.load %arg6[%c0_40, %c0_41] : memref<200x192xbf16, #tpu.memory_space<vmem>>, vector<200x192xbf16>
    %c0_42 = arith.constant 0 : index
    %c0_43 = arith.constant 0 : index
    %44 = vector.load %arg4[%c0_42, %c0_43] : memref<192x192xbf16, #tpu.memory_space<vmem>>, vector<192x192xbf16>
    %cst_44 = arith.constant dense<0.000000e+00> : vector<200x192xf32>
    %45 = tpu.matmul %43, %44, %cst_44 {dimension_numbers = #tpu.dot_dimension_numbers<[1], [0], [0], [1], [0, 0, 1, 1], [], []>} : vector<200x192xbf16>, vector<192x192xbf16>, vector<200x192xf32> -> vector<200x192xf32>
    %46 = vector.extract_strided_slice %45 {offsets = [0, 0], sizes = [192, 64], strides = [1, 1]} : vector<200x192xf32> to vector<192x64xf32>
    %47 = vector.extract_strided_slice %45 {offsets = [1, 64], sizes = [192, 64], strides = [1, 1]} : vector<200x192xf32> to vector<192x64xf32>
    %48 = arith.addf %46, %47 : vector<192x64xf32>
    %49 = vector.extract_strided_slice %45 {offsets = [2, 128], sizes = [192, 64], strides = [1, 1]} : vector<200x192xf32> to vector<192x64xf32>
    %50 = arith.addf %48, %49 : vector<192x64xf32>
    %cst_45 = arith.constant 0.000000e+00 : f32
    %51 = vector.broadcast %cst_45 : f32 to vector<192x64xf32>
    %52 = arith.maximumf %50, %51 : vector<192x64xf32>
    %53 = arith.truncf %52 : vector<192x64xf32> to vector<192x64xbf16>
    %c0_46 = arith.constant 0 : index
    %c192_47 = arith.constant 192 : index
    %c0_48 = arith.constant 0 : index
    %54 = vector.load %arg5[%c0_46, %c192_47, %c0_48] : memref<1x384x64xbf16, #tpu.memory_space<vmem>>, vector<1x192x64xbf16>
    %55 = vector.shape_cast %54 : vector<1x192x64xbf16> to vector<192x64xbf16>
    %56 = vector.shape_cast %53 : vector<192x64xbf16> to vector<1x192x64xbf16>
    tpu.vector_store %arg5[%c0_46, %c192_47, %c0_48], %56 {strides = array<i32>} : memref<1x384x64xbf16, #tpu.memory_space<vmem>>, vector<1x192x64xbf16>,
    return
  }
  func.func @transform_0(%arg0: i32, %arg1: i32) -> (i32, i32, i32) {
    %c0_i32 = arith.constant 0 : i32
    %c0_i32_0 = arith.constant 0 : i32
    return %arg0, %arg1, %c0_i32 : i32, i32, i32
  }
  func.func @transform_1(%arg0: i32, %arg1: i32) -> (i32, i32, i32) {
    %c1_i32 = arith.constant 1 : i32
    %0 = arith.addi %arg1, %c1_i32 : i32
    %c8_i32 = arith.constant 8 : i32
    %1 = arith.muli %0, %c8_i32 : i32
    %c0_i32 = arith.constant 0 : i32
    %c0_i32_0 = arith.constant 0 : i32
    return %arg0, %1, %c0_i32 : i32, i32, i32
  }
  func.func @transform_2(%arg0: i32, %arg1: i32) -> (i32, i32) {
    %c0_i32 = arith.constant 0 : i32
    %c0_i32_0 = arith.constant 0 : i32
    %c0_i32_1 = arith.constant 0 : i32
    return %c0_i32, %c0_i32_0 : i32, i32
  }
  func.func @transform_3(%arg0: i32, %arg1: i32) -> (i32, i32, i32) {
    %c0_i32 = arith.constant 0 : i32
    %c0_i32_0 = arith.constant 0 : i32
    return %arg0, %arg1, %c0_i32 : i32, i32, i32
  }
}

</mosaic_0001>

<bundles_post_ra>
// kernel: tpu_custom_call.1
= control target key start
LH: loop header
LB: loop body
LE: loop exit
PB: predicated region body
PF: predicated region fallthrough
CT: control target
= control target key end

     0   :  { %s3459_s12 = smov 0   ;;  %s3461_s13 = smov 0   ;;  %s4978_s0 = inlined_call_operand.vmem [shape: bf16[2,432,64], index: 0, kind: input, shape index: {}]   ;;  %s4979_s1 = inlined_call_operand.vmem [shape: bf16[2,432,64], index: 1, kind: input, shape index: {}]   ;;  %s4980_s2 = inlined_call_operand.vmem [shape: bf16[192,192], index: 2, kind: input, shape index: {}]   ;;  %s4981_s3 = inlined_call_operand.vmem [shape: bf16[2,384,64], index: 3, kind: output, shape index: {}]  }
   0x1   :  { %s3463_s14 = smov 0  }
   0x2 LB: > { %s25_s15 = sadd.s32 1, %s3431_s13  ;;  %p2841_p0 = scmp.ge.s32.totalorder %s3435_s14, 1  ;;  %s3435_s14 = sphi %s3463_s14, %s13_s14   ;;  %s3431_s13 = sphi %s3461_s13, %s5043_s13   ;;  %s3427_s12 = sphi %s3459_s12, %s5042_s12  }
   0x3   : > { %p27_p1 = scmp.ge.s32.totalorder %s25_s15, 2  ;;  %p191_p2 = scmp.lt.s32.totalorder %s3435_s14, 3 }
   0x5   : > { %s5045_s15 = smov (%p27_p1, %s25_s15), 0  ;;  %p192_p3 = pnand %p2841_p0, %p191_p2 }
   0x7   : > { %195 = sbr.rel (%p192_p3) target bundleno = 697 (0x2b9), region = 32 }
   0xc   : > { %p243_p4 = scmp.lt.s32.totalorder %s3427_s12, 1  ;;  %p281_p5 = scmp.eq.s32.totalorder %s3427_s12, 0 }
   0xd   : > { %vm287_vm0 = vcmask (%p281_p5), 1043456   ;;  %vm288_vm1 = vcmask (%p281_p5), 523268   ;;  %v3437_v0 = vmov (%p281_p5), 0  }
   0xe   : > { %s5047_s12 = smov (!%p243_p4, %s3427_s12), 1  ;;  %286 = sbr.rel (!%p281_p5) target bundleno = 19 (0x13), region = 36  ;;  %vm289_vm2 = vmor (%p281_p5), %vm288_vm1, %vm287_vm0 }
   0xf   : > { %s3383_s16 = smul.u32 216, %s5047_s12  ;;  %290 = vst.msk [vmem:[#allocation2 + $0xc0] sm:$0xff] (%p281_p5), %vm289_vm2, %v3437_v0 }
  0x10   : > { %s3385_s24 = smul.u32 192, %s5047_s12 }
  0x11   : > { %s3480_s19 = scalar_lea.vmem %s4978_s0, %s3383_s16  ;;  %s3285_s20 = sadd.s32 192, %s3383_s16 }
  0x12   : > { %s3485_s23 = scalar_lea.vmem %s4979_s1, %s3285_s20  ;;  %s3490_s27 = scalar_lea.vmem %s4981_s3, %s3385_s24 }
  0x13 PF: > { %v340_v1 = vld [vmem:[%s3480_s19 + $0xc] sm:$0xf]  ;;  %v3333_v2 = vld [vmem:[%s4980_s2 + $0xb4] sm:$0xf]  ;;  %s3438_s30 = smov 64   ;;  %vm315_vm3 = vcmask 519168  }
  0x14   : > { %388 = vrot.lane.b32.xlu0 %v340_v1, %s3438_s30  ;;  %v3034_v3 = vld [vmem:[%s4980_s2 + $0xb8] sm:$0xf0]  ;;  %v3331_v4 = vld [vmem:[%s4980_s2 + $0xa4] sm:$0xf]  ;;  %v3026_v5 = vld [vmem:[%s4980_s2 + $0xa8] sm:$0xf0] }
  0x15   : > { %v3037_v6 = vor.u32 %v3333_v2, %v3034_v3  ;;  %v3032_v7 = vld [vmem:[%s4980_s2 + $0xb0] sm:$0xf]  ;;  %v3334_v8 = vld [vmem:[%s4980_s2 + $0xb4] sm:$0xf0]  ;;  %v342_v9 = vld [vmem:[%s3480_s19 + $0x14] sm:$0xf]  ;;  %v3029_v11 = vor.u32 %v3331_v4, %v3026_v5 }
  0x16   : > { %v3033_v10 = vor.u32 %v3334_v8, %v3032_v7  ;;  %392 = vrot.lane.b32.xlu1 %v342_v9, %s3438_s30  ;;  %v341_v12 = vld [vmem:[%s3480_s19 + $0x10] sm:$0xf]  ;;  %v3024_v13 = vld [vmem:[%s4980_s2 + $0xa0] sm:$0xf]  ;;  %v3332_v14 = vld [vmem:[%s4980_s2 + $0xa4] sm:$0xf0] }
  0x17   : > { %1079 = vmatpush.bf16.msra.mxu3 %v3037_v6  ;;  %v3329_v15 = vld [vmem:[%s4980_s2 + $0x94] sm:$0xf]  ;;  %v3018_v16 = vld [vmem:[%s4980_s2 + $0x98] sm:$0xf0]  ;;  %v3025_v17 = vor.u32 %v3332_v14, %v3024_v13  ;;  %v3016_v18 = vld [vmem:[%s4980_s2 + $0x90] sm:$0xf] }
  0x18   : > { %933 = vmatpush.bf16.msra.mxu1 %v3033_v10  ;;  %v3330_v19 = vld [vmem:[%s4980_s2 + $0x94] sm:$0xf0]  ;;  %v486_v21 = vld [vmem:[%s3480_s19 + $0x1c] sm:$0xf]  ;;  %v3327_v22 = vld [vmem:[%s4980_s2 + $0x84] sm:$0xf]  ;;  %v3021_v23 = vor.u32 %v3329_v15, %v3018_v16 }
  0x19   : > { %v485_v20 = vld [vmem:[%s3480_s19 + $0x18] sm:$0xf]  ;;  %v3010_v24 = vld [vmem:[%s4980_s2 + $0x88] sm:$0xf0]  ;;  %510 = vst.msk [vmem:[#allocation2 + $0xc] sm:$0xf] %vm315_vm3, %v486_v21  ;;  %v3017_v26 = vor.u32 %v3330_v19, %v3016_v18 }
  0x1a   : > { %509 = vst.msk [vmem:[#allocation2 + $0x4] sm:$0xf] %vm315_vm3, %v485_v20  ;;  %v343_v25 = vld [vmem:[%s3480_s19 + $0x18] sm:$0xf]  ;;  %v3008_v27 = vld [vmem:[%s4980_s2 + $0x80] sm:$0xf]  ;;  %v3013_v35 = vor.u32 %v3327_v22, %v3010_v24 }
  0x1b   : > { %1080 = vmatpush.bf16.msra.mxu3 %v3029_v11  ;;  %v3328_v28 = vld [vmem:[%s4980_s2 + $0x84] sm:$0xf0]  ;;  %v3250_v29 = vld [vmem:[%s4980_s2 + $0xb0] sm:$0xf]  ;;  %v3382_v30 = vld [vmem:[%s4980_s2 + $0xb4] sm:$0xf0] }
  0x1c   : > { %390 = vrot.lane.b32.xlu0 %v341_v12, %s3438_s30  ;;  %934 = vmatpush.bf16.msra.mxu1 %v3025_v17  ;;  %v3218_v31 = vld [vmem:[%s4980_s2 + $0x70] sm:$0xf]  ;;  %v487_v32 = vld [vmem:[%s3480_s19 + $0x20] sm:$0xf]  ;;  %v3374_v33 = vld [vmem:[%s4980_s2 + $0x74] sm:$0xf0]  ;;  %v3009_v39 = vor.u32 %v3328_v28, %v3008_v27  ;;  %v3251_v40 = vor.u32 %v3382_v30, %v3250_v29 }
  0x1d   : > { %v488_v34 = vld [vmem:[%s3480_s19 + $0x24] sm:$0xf]  ;;  %511 = vst.msk [vmem:[#allocation2 + $0x14] sm:$0xf] %vm315_vm3, %v487_v32  ;;  %v1706_v36 = vld [vmem:[%s3480_s19 + $0x78] sm:$0xf]  ;;  %v3219_v43 = vor.u32 %v3374_v33, %v3218_v31 }
  0x1e   : > { %394 = vrot.lane.b32.xlu1 %v343_v25, %s3438_s30  ;;  %512 = vst.msk [vmem:[#allocation2 + $0x1c] sm:$0xf] %vm315_vm3, %v488_v34  ;;  %v344_v37 = vld [vmem:[%s3480_s19 + $0x1c] sm:$0xf]  ;;  %v489_v41 = vld [vmem:[%s3480_s19 + $0x28] sm:$0xf] }
  0x1f   : > { %1081 = vmatpush.bf16.msra.mxu3 %v3021_v23  ;;  %v1707_v38 = vld [vmem:[%s3480_s19 + $0x7c] sm:$0xf]  ;;  %396 = vrot.lane.b32.xlu2 %v344_v37, %s3438_s30  ;;  %v490_v44 = vld [vmem:[%s3480_s19 + $0x2c] sm:$0xf]  ;;  %513 = vst.msk [vmem:[#allocation2 + $0x24] sm:$0xf] %vm315_vm3, %v489_v41 }
  0x20   : > { %935 = vmatpush.bf16.msra.mxu1 %v3017_v26  ;;  %v2850_v45 = vld [vmem:[#allocation2 + $0x8] sm:$0xf0]  ;;  %vm816_vm4 = vcmask 523264   ;;  %v1708_v47 = vld [vmem:[%s3480_s19 + $0x80] sm:$0xf]  ;;  %vm460_vm5 = vcmask 1043968  }
  0x21   : > { %v3287_v42 = vld [vmem:[#allocation2 + $0x4] sm:$0xf]  ;;  %1725 = vst.msk [vmem:[#allocation2 + $0xc] sm:$0xf] %vm315_vm3, %v1707_v38  ;;  %v1710_v51 = vld [vmem:[%s3480_s19 + $0x88] sm:$0xf] }
  0x22   : > { %1724 = vst.msk [vmem:[#allocation2 + $0x4] sm:$0xf] %vm315_vm3, %v1706_v36  ;;  %v2853_v46 = vor.u32 %v3287_v42, %v2850_v45  ;;  %v1709_v48 = vld [vmem:[%s3480_s19 + $0x84] sm:$0xf]  ;;  %v1711_v52 = vld [vmem:[%s3480_s19 + $0x8c] sm:$0xf] }
  0x23   : > { %1082 = vmatpush.bf16.msra.mxu3 %v3013_v35  ;;  %514 = vst.msk [vmem:[#allocation2 + $0x2c] sm:$0xf] %vm315_vm3, %v490_v44  ;;  %v3210_v53 = vld [vmem:[%s4980_s2 + $0x60] sm:$0xf]  ;;  %v3372_v55 = vld [vmem:[%s4980_s2 + $0x64] sm:$0xf0] }
  0x24   : > { %936 = vmatpush.bf16.msra.mxu1 %v3009_v39  ;;  %v3289_v49 = vld [vmem:[#allocation2 + $0x14] sm:$0xf]  ;;  %v345_v56 = vld [vmem:[%s3480_s19 + $0x20] sm:$0xf]  ;;  %v3211_v57 = vor.u32 %v3372_v55, %v3210_v53  ;;  %v347_v58 = vld [vmem:[%s3480_s19 + $0x28] sm:$0xf] }
  0x25   : > { %v2858_v50 = vld [vmem:[#allocation2 + $0x18] sm:$0xf0]  ;;  %1726 = vst.msk [vmem:[#allocation2 + $0x14] sm:$0xf] %vm315_vm3, %v1708_v47  ;;  %v346_v59 = vld [vmem:[%s3480_s19 + $0x24] sm:$0xf] }
  0x26   : > { %3051 = vmatmul.msk.bf16.vlgmr.msra.gmra.mxu3 %vm816_vm4, %v2853_v46  ;;  %1727 = vst.msk [vmem:[#allocation2 + $0x1c] sm:$0xf] %vm315_vm3, %v1709_v48  ;;  %v3291_v54 = vld [vmem:[#allocation2 + $0x24] sm:$0xf]  ;;  %402 = vrot.lane.b32.xlu1 %v347_v58, %s3438_s30  ;;  %v491_v60 = vld [vmem:[%s3480_s19 + $0x30] sm:$0xf]  ;;  %v2861_v63 = vor.u32 %v3289_v49, %v2858_v50 }
  0x27   : > { %2153 = vmatpush.bf16.msrb.mxu3 %v3251_v40  ;;  %3038 = vmatmul.msk.bf16.vlgmr.msra.gmra.mxu1 %vm816_vm4, %v2853_v46  ;;  %1728 = vst.msk [vmem:[#allocation2 + $0x24] sm:$0xf] %vm315_vm3, %v1710_v51  ;;  %v492_v61 = vld [vmem:[%s3480_s19 + $0x34] sm:$0xf]  ;;  %v1712_v2 = vld [vmem:[%s3480_s19 + $0x90] sm:$0xf] }
  0x28   : > { %2076 = vmatpush.bf16.msrb.mxu1 %v3219_v43  ;;  %398 = vrot.lane.b32.xlu2 %v345_v56, %s3438_s30  ;;  %515 = vst.msk [vmem:[#allocation2 + $0x34] sm:$0xf] %vm315_vm3, %v491_v60  ;;  %v1713_v3 = vld [vmem:[%s3480_s19 + $0x94] sm:$0xf]  ;;  %v349_v4 = vld [vmem:[%s3480_s19 + $0x30] sm:$0xf] }
  0x29   : > { %400 = vrot.lane.b32.xlu0 %v346_v59, %s3438_s30  ;;  %516 = vst.msk [vmem:[#allocation2 + $0x3c] sm:$0xf] %vm315_vm3, %v492_v61  ;;  %v350_v5 = vld [vmem:[%s3480_s19 + $0x34] sm:$0xf]  ;;  %v3242_v6 = vld [vmem:[%s4980_s2 + $0xa0] sm:$0xf] }
  0x2a   : > { %v2866_v62 = vld [vmem:[#allocation2 + $0x28] sm:$0xf0]  ;;  %v3380_v7 = vld [vmem:[%s4980_s2 + $0xa4] sm:$0xf0]  ;;  %v493_v9 = vld [vmem:[%s3480_s19 + $0x38] sm:$0xf] }
  0x2b   : > { %1729 = vst.msk [vmem:[#allocation2 + $0x2c] sm:$0xf] %vm315_vm3, %v1711_v52  ;;  %v3243_v8 = vor.u32 %v3380_v7, %v3242_v6  ;;  %v494_v10 = vld [vmem:[%s3480_s19 + $0x3c] sm:$0xf]  ;;  %v353_v11 = vld [vmem:[%s3480_s19 + $0x40] sm:$0xf]  ;;  %v2869_v13 = vor.u32 %v3291_v54, %v2866_v62 }
  0x2c   : > { %2077 = vmatpush.bf16.msrb.mxu1 %v3211_v57  ;;  %517 = vst.msk [vmem:[#allocation2 + $0x44] sm:$0xf] %vm315_vm3, %v493_v9  ;;  %v352_v12 = vld [vmem:[%s3480_s19 + $0x3c] sm:$0xf]  ;;  %v1714_v16 = vld [vmem:[%s3480_s19 + $0x98] sm:$0xf] }
  0x2d   : > { %2154 = vmatpush.bf16.msrb.mxu3 %v3243_v8  ;;  %518 = vst.msk [vmem:[#allocation2 + $0x4c] sm:$0xf] %vm315_vm3, %v494_v10  ;;  %v1715_v17 = vld [vmem:[%s3480_s19 + $0x9c] sm:$0xf]  ;;  %v3202_v18 = vld [vmem:[%s4980_s2 + $0x50] sm:$0xf] }
  0x2e   : > { %408 = vrot.lane.b32.xlu1 %v350_v5, %s3438_s30  ;;  %v3370_v19 = vld [vmem:[%s4980_s2 + $0x54] sm:$0xf0]  ;;  %v348_v20 = vld [vmem:[%s3480_s19 + $0x2c] sm:$0xf]  ;;  %v355_v23 = vld [vmem:[%s3480_s19 + $0x48] sm:$0xf] }
  0x2f   : > { %v3293_v0 = vld [vmem:[#allocation2 + $0x34] sm:$0xf]  ;;  %v3203_v21 = vor.u32 %v3370_v19, %v3202_v18  ;;  %v356_v22 = vld [vmem:[%s3480_s19 + $0x4c] sm:$0xf]  ;;  %v495_v24 = vld [vmem:[%s3480_s19 + $0x40] sm:$0xf] }
  0x30   : > { %v2874_v1 = vld [vmem:[#allocation2 + $0x38] sm:$0xf0]  ;;  %1730 = vst.msk [vmem:[#allocation2 + $0x34] sm:$0xf] %vm315_vm3, %v1712_v2  ;;  %404 = vrot.lane.b32.xlu2 %v348_v20, %s3438_s30  ;;  %v496_v25 = vld [vmem:[%s3480_s19 + $0x44] sm:$0xf] }
  0x31   : > { %1731 = vst.msk [vmem:[#allocation2 + $0x3c] sm:$0xf] %vm315_vm3, %v1713_v3  ;;  %406 = vrot.lane.b32.xlu0 %v349_v4, %s3438_s30  ;;  %2078 = vmatpush.bf16.msrb.mxu1 %v3203_v21  ;;  %v351_v26 = vld [vmem:[%s3480_s19 + $0x38] sm:$0xf]  ;;  %v358_v28 = vld [vmem:[%s3480_s19 + $0x54] sm:$0xf]  ;;  %v2877_v29 = vor.u32 %v3293_v0, %v2874_v1 }
  0x32   : > { %519 = vst.msk [vmem:[#allocation2 + $0x54] sm:$0xf] %vm315_vm3, %v495_v24  ;;  %v359_v27 = vld [vmem:[%s3480_s19 + $0x58] sm:$0xf]  ;;  %v1716_v32 = vld [vmem:[%s3480_s19 + $0xa0] sm:$0xf] }
  0x33   : > { %v3628_v14 = vld [vmem:[#allocation2 + $0x44] sm:$0xf]  ;;  %520 = vst.msk [vmem:[#allocation2 + $0x5c] sm:$0xf] %vm315_vm3, %v496_v25  ;;  %v3000_v34 = vld [vmem:[%s4980_s2 + $0x70] sm:$0xf] }
  0x34   : > { %v3630_v15 = vld [vmem:[#allocation2 + $0x48] sm:$0xf0]  ;;  %1732 = vst.msk [vmem:[#allocation2 + $0x44] sm:$0xf] %vm315_vm3, %v1714_v16  ;;  %v1717_v33 = vld [vmem:[%s3480_s19 + $0xa4] sm:$0xf] }
  0x35   : > { %1733 = vst.msk [vmem:[#allocation2 + $0x4c] sm:$0xf] %vm315_vm3, %v1715_v17  ;;  %v3326_v35 = vld [vmem:[%s4980_s2 + $0x74] sm:$0xf0]  ;;  %v3325_v36 = vld [vmem:[%s4980_s2 + $0x74] sm:$0xf]  ;;  %v2885_v62 = vor.u32 %v3628_v14, %v3630_v15 }
  0x36   : > { %3052 = vmatmul.msk.bf16.gmra.mxu3 %vm816_vm4, %v2861_v63  ;;  %414 = vrot.lane.b32.xlu1 %v353_v11, %s3438_s30  ;;  %v3001_v37 = vor.u32 %v3326_v35, %v3000_v34  ;;  %v3002_v38 = vld [vmem:[%s4980_s2 + $0x78] sm:$0xf0]  ;;  %v354_v39 = vld [vmem:[%s3480_s19 + $0x44] sm:$0xf]  ;;  %v1562_v41 = vld [vmem:[%s3480_s19 + $0x6c] sm:$0xf] }
  0x37   : > { %3039 = vmatmul.msk.bf16.gmra.mxu1 %vm816_vm4, %v2861_v63  ;;  %v3005_v40 = vor.u32 %v3325_v36, %v3002_v38  ;;  %v361_v42 = vld [vmem:[%s3480_s19 + $0x60] sm:$0xf]  ;;  %v3324_v44 = vld [vmem:[%s4980_s2 + $0x64] sm:$0xf0]  ;;  %v3323_v45 = vld [vmem:[%s4980_s2 + $0x64] sm:$0xf] }
  0x38   : > { %410 = vrot.lane.b32.xlu2 %v351_v26, %s3438_s30  ;;  %v2992_v43 = vld [vmem:[%s4980_s2 + $0x60] sm:$0xf]  ;;  %856 = vmatpush.bf16.msra.mxu0 %v3001_v37  ;;  %v2994_v46 = vld [vmem:[%s4980_s2 + $0x68] sm:$0xf0]  ;;  %v3368_v50 = vld [vmem:[%s4980_s2 + $0x44] sm:$0xf0] }
  0x39   : > { %412 = vrot.lane.b32.xlu0 %v352_v12, %s3438_s30  ;;  %v3660_v30 = vld [vmem:[#allocation2 + $0x54] sm:$0xf]  ;;  %1002 = vmatpush.bf16.msra.mxu2 %v3005_v40  ;;  %v2993_v47 = vor.u32 %v3324_v44, %v2992_v43  ;;  %v2997_v48 = vor.u32 %v3323_v45, %v2994_v46  ;;  %v3194_v49 = vld [vmem:[%s4980_s2 + $0x40] sm:$0xf]  ;;  %v2984_v51 = vld [vmem:[%s4980_s2 + $0x50] sm:$0xf] }
  0x3a   : > { %v3662_v31 = vld [vmem:[#allocation2 + $0x58] sm:$0xf0]  ;;  %1734 = vst.msk [vmem:[#allocation2 + $0x54] sm:$0xf] %vm315_vm3, %v1716_v32  ;;  %v3195_v52 = vor.u32 %v3368_v50, %v3194_v49  ;;  %v3322_v53 = vld [vmem:[%s4980_s2 + $0x54] sm:$0xf0] }
  0x3b   : > { %1735 = vst.msk [vmem:[#allocation2 + $0x5c] sm:$0xf] %vm315_vm3, %v1717_v33  ;;  %v3321_v54 = vld [vmem:[%s4980_s2 + $0x54] sm:$0xf]  ;;  %v2986_v55 = vld [vmem:[%s4980_s2 + $0x58] sm:$0xf0]  ;;  %v2985_v57 = vor.u32 %v3322_v53, %v2984_v51  ;;  %v2893_v40 = vor.u32 %v3660_v30, %v3662_v31 }
  0x3c   : > { %v497_v56 = vld [vmem:[%s3480_s19 + $0x48] sm:$0xf]  ;;  %857 = vmatpush.bf16.msra.mxu0 %v2993_v47  ;;  %2079 = vmatpush.bf16.msrb.mxu1 %v3195_v52  ;;  %v357_v58 = vld [vmem:[%s3480_s19 + $0x50] sm:$0xf]  ;;  %v498_v59 = vld [vmem:[%s3480_s19 + $0x4c] sm:$0xf]  ;;  %v2989_v60 = vor.u32 %v3321_v54, %v2986_v55 }
  0x3d   : > { %521 = vst.msk [vmem:[#allocation2 + $0x64] sm:$0xf] %vm315_vm3, %v497_v56  ;;  %1003 = vmatpush.bf16.msra.mxu2 %v2997_v48  ;;  %v362_v61 = vld [vmem:[%s3480_s19 + $0x64] sm:$0xf]  ;;  %v2976_v63 = vld [vmem:[%s4980_s2 + $0x40] sm:$0xf] }
  0x3e   : > { %420 = vrot.lane.b32.xlu1 %v356_v22, %s3438_s30  ;;  %522 = vst.msk [vmem:[#allocation2 + $0x6c] sm:$0xf] %vm315_vm3, %v498_v59  ;;  %v3320_v0 = vld [vmem:[%s4980_s2 + $0x44] sm:$0xf0]  ;;  %v3319_v1 = vld [vmem:[%s4980_s2 + $0x44] sm:$0xf] }
  0x3f   : > { %v2977_v2 = vor.u32 %v3320_v0, %v2976_v63  ;;  %v2978_v3 = vld [vmem:[%s4980_s2 + $0x48] sm:$0xf0]  ;;  %v1718_v5 = vld [vmem:[%s3480_s19 + $0xa8] sm:$0xf]  ;;  %v291_v9 = vld [vmem:[%s3480_s19] sm:$0xf] }
  0x40   : > { %416 = vrot.lane.b32.xlu2 %v354_v39, %s3438_s30  ;;  %858 = vmatpush.bf16.msra.mxu0 %v2985_v57  ;;  %v1719_v6 = vld [vmem:[%s3480_s19 + $0xac] sm:$0xf]  ;;  %v2981_v7 = vor.u32 %v3319_v1, %v2978_v3  ;;  %v2968_v10 = vld [vmem:[%s4980_s2 + $0x30] sm:$0xf]  ;;  %v3318_v11 = vld [vmem:[%s4980_s2 + $0x34] sm:$0xf0] }
  0x41   : > { %418 = vrot.lane.b32.xlu0 %v355_v23, %s3438_s30  ;;  %1004 = vmatpush.bf16.msra.mxu2 %v2989_v60  ;;  %316 = vst.msk [vmem:[#allocation2] sm:$0xf] %vm315_vm3, %v291_v9  ;;  %v2969_v12 = vor.u32 %v3318_v11, %v2968_v10  ;;  %v2970_v14 = vld [vmem:[%s4980_s2 + $0x38] sm:$0xf0]  ;;  %v363_v17 = vld [vmem:[%s3480_s19 + $0x68] sm:$0xf] }
  0x42   : > { %v360_v16 = vld [vmem:[%s3480_s19 + $0x5c] sm:$0xf]  ;;  %v1565_v18 = vld [vmem:[%s3480_s19 + $0x78] sm:$0xf]  ;;  %v2960_v19 = vld [vmem:[%s4980_s2 + $0x20] sm:$0xf] }
  0x43   : > { %v3316_v20 = vld [vmem:[%s4980_s2 + $0x24] sm:$0xf0]  ;;  %v3315_v21 = vld [vmem:[%s4980_s2 + $0x24] sm:$0xf]  ;;  %v2962_v23 = vld [vmem:[%s4980_s2 + $0x28] sm:$0xf0] }
  0x44   : > { %v3741_v4 = vld [vmem:[#allocation2 + $0x64] sm:$0xf]  ;;  %859 = vmatpush.bf16.msra.mxu0 %v2977_v2  ;;  %v2961_v22 = vor.u32 %v3316_v20, %v2960_v19  ;;  %v293_v24 = vld [vmem:[%s3480_s19 + $0x8] sm:$0xf]  ;;  %v499_v25 = vld [vmem:[%s3480_s19 + $0x50] sm:$0xf]  ;;  %v2965_v26 = vor.u32 %v3315_v21, %v2962_v23 }
  0x45   : > { %v3746_v8 = vld [vmem:[#allocation2 + $0x68] sm:$0xf0]  ;;  %1736 = vst.msk [vmem:[#allocation2 + $0x64] sm:$0xf] %vm315_vm3, %v1718_v5  ;;  %1005 = vmatpush.bf16.msra.mxu2 %v2981_v7  ;;  %v3314_v32 = vld [vmem:[%s4980_s2 + $0x14] sm:$0xf0] }
  0x46   : > { %3053 = vmatmul.msk.bf16.gmra.mxu3 %vm816_vm4, %v2869_v13  ;;  %426 = vrot.lane.b32.xlu1 %v359_v27, %s3438_s30  ;;  %1737 = vst.msk [vmem:[#allocation2 + $0x6c] sm:$0xf] %vm315_vm3, %v1719_v6  ;;  %v292_v27 = vld [vmem:[%s3480_s19 + $0x4] sm:$0xf]  ;;  %v3313_v34 = vld [vmem:[%s4980_s2 + $0x14] sm:$0xf]  ;;  %v2901_v2 = vor.u32 %v3741_v4, %v3746_v8 }
  0x47   : > { %3040 = vmatmul.msk.bf16.gmra.mxu1 %vm816_vm4, %v2869_v13  ;;  %v3317_v13 = vld [vmem:[%s4980_s2 + $0x34] sm:$0xf]  ;;  %318 = vst.msk [vmem:[#allocation2 + $0x10] sm:$0xf] %vm315_vm3, %v293_v24  ;;  %v2954_v35 = vld [vmem:[%s4980_s2 + $0x18] sm:$0xf0] }
  0x48   : > { %422 = vrot.lane.b32.xlu2 %v357_v58, %s3438_s30  ;;  %v2973_v15 = vor.u32 %v3317_v13, %v2970_v14  ;;  %860 = vmatpush.bf16.msra.mxu0 %v2969_v12  ;;  %523 = vst.msk [vmem:[#allocation2 + $0x74] sm:$0xf] %vm315_vm3, %v499_v25  ;;  %v3234_v36 = vld [vmem:[%s4980_s2 + $0x90] sm:$0xf]  ;;  %v2957_v37 = vor.u32 %v3313_v34, %v2954_v35  ;;  %v3378_v38 = vld [vmem:[%s4980_s2 + $0x94] sm:$0xf0] }
  0x49   : > { %424 = vrot.lane.b32.xlu0 %v358_v28, %s3438_s30  ;;  %v500_v28 = vld [vmem:[%s3480_s19 + $0x54] sm:$0xf]  ;;  %317 = vst.msk [vmem:[#allocation2 + $0x8] sm:$0xf] %vm315_vm3, %v292_v27  ;;  %v1563_v39 = vld [vmem:[%s3480_s19 + $0x70] sm:$0xf] }
  0x4a   : > { %1006 = vmatpush.bf16.msra.mxu2 %v2973_v15  ;;  %524 = vst.msk [vmem:[#allocation2 + $0x7c] sm:$0xf] %vm315_vm3, %v500_v28  ;;  %v3312_v43 = vld [vmem:[%s4980_s2 + $0x4] sm:$0xf0]  ;;  %v3311_v44 = vld [vmem:[%s4980_s2 + $0x4] sm:$0xf] }
  0x4b   : > { %v2946_v45 = vld [vmem:[%s4980_s2 + $0x8] sm:$0xf0]  ;;  %v1720_v46 = vld [vmem:[%s3480_s19 + $0xb0] sm:$0xf]  ;;  %v1721_v47 = vld [vmem:[%s3480_s19 + $0xb4] sm:$0xf] }
  0x4c   : > { %861 = vmatpush.bf16.msra.mxu0 %v2961_v22  ;;  %v2949_v48 = vor.u32 %v3311_v44, %v2946_v45  ;;  %v294_v49 = vld [vmem:[%s3480_s19 + $0xc] sm:$0xf]  ;;  %v3381_v51 = vld [vmem:[%s4980_s2 + $0xb4] sm:$0xf]  ;;  %v3252_v52 = vld [vmem:[%s4980_s2 + $0xb8] sm:$0xf0] }
  0x4d   : > { %319 = vst.msk [vmem:[#allocation2 + $0x18] sm:$0xf] %vm315_vm3, %v294_v49  ;;  %v3255_v53 = vor.u32 %v3381_v51, %v3252_v52  ;;  %v3186_v54 = vld [vmem:[%s4980_s2 + $0x30] sm:$0xf]  ;;  %v3366_v55 = vld [vmem:[%s4980_s2 + $0x34] sm:$0xf0] }
  0x4e   : > { %1604 = vrot.lane.b32.xlu1 %v1562_v41, %s3438_s30  ;;  %1007 = vmatpush.bf16.msra.mxu2 %v2965_v26  ;;  %v3235_v41 = vor.u32 %v3378_v38, %v3234_v36  ;;  %v1566_v56 = vld [vmem:[%s3480_s19 + $0x7c] sm:$0xf]  ;;  %v3187_v57 = vor.u32 %v3366_v55, %v3186_v54  ;;  %v295_v58 = vld [vmem:[%s3480_s19 + $0x10] sm:$0xf]  ;;  %v3373_v59 = vld [vmem:[%s4980_s2 + $0x74] sm:$0xf] }
  0x4f   : > { %v3821_v30 = vld [vmem:[#allocation2 + $0x74] sm:$0xf]  ;;  %v3220_v60 = vld [vmem:[%s4980_s2 + $0x78] sm:$0xf0]  ;;  %320 = vst.msk [vmem:[#allocation2 + $0x20] sm:$0xf] %vm315_vm3, %v295_v58 }
  0x50   : > { %428 = vrot.lane.b32.xlu2 %v360_v16, %s3438_s30  ;;  %2155 = vmatpush.bf16.msrb.mxu3 %v3235_v41  ;;  %1738 = vst.msk [vmem:[#allocation2 + $0x74] sm:$0xf] %vm315_vm3, %v1720_v46  ;;  %v1564_v63 = vld [vmem:[%s3480_s19 + $0x74] sm:$0xf]  ;;  %v501_v0 = vld [vmem:[%s3480_s19 + $0x58] sm:$0xf] }
  0x51   : > { %430 = vrot.lane.b32.xlu0 %v361_v42, %s3438_s30  ;;  %v2944_v42 = vld [vmem:[%s4980_s2] sm:$0xf]  ;;  %v2906_v50 = vld [vmem:[#allocation2 + $0x78] sm:$0xf0]  ;;  %2080 = vmatpush.bf16.msrb.mxu1 %v3187_v57  ;;  %525 = vst.msk [vmem:[#allocation2 + $0x84] sm:$0xf] %vm315_vm3, %v501_v0 }
  0x52   : > { %1008 = vmatpush.bf16.msra.mxu2 %v2957_v37  ;;  %v2945_v31 = vor.u32 %v3312_v43, %v2944_v42  ;;  %1739 = vst.msk [vmem:[#allocation2 + $0x7c] sm:$0xf] %vm315_vm3, %v1721_v47  ;;  %v502_v1 = vld [vmem:[%s3480_s19 + $0x5c] sm:$0xf]  ;;  %v1722_v5 = vld [vmem:[%s3480_s19 + $0xb8] sm:$0xf]  ;;  %v2909_v19 = vor.u32 %v3821_v30, %v2906_v50 }
  0x53   : > { %526 = vst.msk [vmem:[#allocation2 + $0x8c] sm:$0xf] %vm315_vm3, %v502_v1  ;;  %v1723_v7 = vld [vmem:[%s3480_s19 + $0xbc] sm:$0xf]  ;;  %v296_v11 = vld [vmem:[%s3480_s19 + $0x14] sm:$0xf] }
  0x54   : > { %v1569_v8 = vld [vmem:[%s3480_s19 + $0x88] sm:$0xf]  ;;  %v1568_v12 = vld [vmem:[%s3480_s19 + $0x84] sm:$0xf]  ;;  %321 = vst.msk [vmem:[#allocation2 + $0x28] sm:$0xf] %vm315_vm3, %v296_v11 }
  0x55   : > { %v503_v13 = vld [vmem:[%s3480_s19 + $0x60] sm:$0xf]  ;;  %v504_v14 = vld [vmem:[%s3480_s19 + $0x64] sm:$0xf]  ;;  %v298_v35 = vld [vmem:[%s3480_s19 + $0x1c] sm:$0xf] }
  0x56   : > { %3054 = vmatmul.msk.bf16.gmra.mxu3 %vm816_vm4, %v2877_v29  ;;  %434 = vrot.lane.b32.xlu1 %v363_v17, %s3438_s30  ;;  %527 = vst.msk [vmem:[#allocation2 + $0x94] sm:$0xf] %vm315_vm3, %v503_v13  ;;  %v3178_v17 = vld [vmem:[%s4980_s2 + $0x20] sm:$0xf]  ;;  %v1743_v26 = vld [vmem:[%s3485_s23 + $0x4] sm:$0xf] }
  0x57   : > { %3041 = vmatmul.msk.bf16.gmra.mxu1 %vm816_vm4, %v2877_v29  ;;  %v2952_v29 = vld [vmem:[%s4980_s2 + $0x10] sm:$0xf]  ;;  %1009 = vmatpush.bf16.msra.mxu2 %v2949_v48  ;;  %528 = vst.msk [vmem:[#allocation2 + $0x9c] sm:$0xf] %vm315_vm3, %v504_v14  ;;  %v1567_v21 = vld [vmem:[%s3480_s19 + $0x80] sm:$0xf] }
  0x58   : > { %v2953_v33 = vor.u32 %v3314_v32, %v2952_v29  ;;  %1606 = vrot.lane.b32.xlu2 %v1563_v39, %s3438_s30  ;;  %v3303_v6 = vld [vmem:[#allocation2 + $0x84] sm:$0xf]  ;;  %v1742_v25 = vld [vmem:[%s3485_s23] sm:$0xf]  ;;  %v3212_v32 = vld [vmem:[%s4980_s2 + $0x68] sm:$0xf0] }
  0x59   : > { %432 = vrot.lane.b32.xlu0 %v362_v61, %s3438_s30  ;;  %1740 = vst.msk [vmem:[#allocation2 + $0x84] sm:$0xf] %vm315_vm3, %v1722_v5  ;;  %v3371_v29 = vld [vmem:[%s4980_s2 + $0x64] sm:$0xf]  ;;  %v297_v36 = vld [vmem:[%s3480_s19 + $0x18] sm:$0xf] }
  0x5a   : > { %862 = vmatpush.bf16.msra.mxu0 %v2953_v33  ;;  %v2914_v10 = vld [vmem:[#allocation2 + $0x88] sm:$0xf0]  ;;  %v1571_v33 = vld [vmem:[%s3480_s19 + $0x90] sm:$0xf]  ;;  %v3215_v34 = vor.u32 %v3371_v29, %v3212_v32  ;;  %323 = vst.msk [vmem:[#allocation2 + $0x38] sm:$0xf] %vm315_vm3, %v298_v35 }
  0x5b   : > { %2299 = vmatpush.bf16.msrb.mxu2 %v3255_v53  ;;  %1741 = vst.msk [vmem:[#allocation2 + $0x8c] sm:$0xf] %vm315_vm3, %v1723_v7  ;;  %v505_v39 = vld [vmem:[%s3480_s19 + $0x68] sm:$0xf]  ;;  %v2917_v41 = vor.u32 %v3303_v6, %v2914_v10  ;;  %v1745_v45 = vld [vmem:[%s3485_s23 + $0xc] sm:$0xf] }
  0x5c   : > { %322 = vst.msk [vmem:[#allocation2 + $0x30] sm:$0xf] %vm315_vm3, %v297_v36  ;;  %v299_v49 = vld [vmem:[%s3480_s19 + $0x20] sm:$0xf]  ;;  %v3376_v52 = vld [vmem:[%s4980_s2 + $0x84] sm:$0xf0] }
  0x5d   : > { %v3895_v23 = vld [vmem:[#allocation2 + $0x94] sm:$0xf]  ;;  %529 = vst.msk [vmem:[#allocation2 + $0xa4] sm:$0xf] %vm315_vm3, %v505_v39  ;;  %v3226_v51 = vld [vmem:[%s4980_s2 + $0x80] sm:$0xf] }
  0x5e   : > { %863 = vmatpush.bf16.msra.mxu0 %v2945_v31  ;;  %1612 = vrot.lane.b32.xlu1 %v1566_v56, %s3438_s30  ;;  %v3901_v28 = vld [vmem:[#allocation2 + $0x98] sm:$0xf0]  ;;  %1748 = vst.msk [vmem:[#allocation2 + $0x94] sm:$0xf] %vm315_vm3, %v1742_v25  ;;  %v1744_v31 = vld [vmem:[%s3485_s23 + $0x8] sm:$0xf]  ;;  %v3227_v53 = vor.u32 %v3376_v52, %v3226_v51 }
  0x5f   : > { %1749 = vst.msk [vmem:[#allocation2 + $0x9c] sm:$0xf] %vm315_vm3, %v1743_v26  ;;  %v3379_v54 = vld [vmem:[%s4980_s2 + $0xa4] sm:$0xf]  ;;  %v3244_v55 = vld [vmem:[%s4980_s2 + $0xa8] sm:$0xf0]  ;;  %v2925_v11 = vor.u32 %v3895_v23, %v3901_v28 }
  0x60   : > { %1608 = vrot.lane.b32.xlu2 %v1564_v63, %s3438_s30  ;;  %324 = vst.msk [vmem:[#allocation2 + $0x40] sm:$0xf] %vm315_vm3, %v299_v49  ;;  %v3247_v56 = vor.u32 %v3379_v54, %v3244_v55  ;;  %v1572_v57 = vld [vmem:[%s3480_s19 + $0x94] sm:$0xf]  ;;  %v3170_v58 = vld [vmem:[%s4980_s2 + $0x10] sm:$0xf]  ;;  %2156 = vmatpush.bf16.msrb.mxu3 %v3227_v53 }
  0x61   : > { %1610 = vrot.lane.b32.xlu0 %v1565_v18, %s3438_s30  ;;  %v3364_v18 = vld [vmem:[%s4980_s2 + $0x24] sm:$0xf0]  ;;  %v300_v63 = vld [vmem:[%s3480_s19 + $0x24] sm:$0xf]  ;;  %v302_v0 = vld [vmem:[%s3480_s19 + $0x2c] sm:$0xf] }
  0x62   : > { %v3179_v20 = vor.u32 %v3364_v18, %v3178_v17  ;;  %2300 = vmatpush.bf16.msrb.mxu2 %v3247_v56  ;;  %325 = vst.msk [vmem:[#allocation2 + $0x48] sm:$0xf] %vm315_vm3, %v300_v63  ;;  %v507_v5 = vld [vmem:[%s3480_s19 + $0x70] sm:$0xf]  ;;  %v508_v6 = vld [vmem:[%s3480_s19 + $0x74] sm:$0xf] }
  0x63   : > { %327 = vst.msk [vmem:[#allocation2 + $0x58] sm:$0xf] %vm315_vm3, %v302_v0  ;;  %v3204_v10 = vld [vmem:[%s4980_s2 + $0x58] sm:$0xf0]  ;;  %v308_v32 = vld [vmem:[%s3480_s19 + $0x44] sm:$0xf] }
  0x64   : > { %2081 = vmatpush.bf16.msrb.mxu1 %v3179_v20  ;;  %v3926_v30 = vld [vmem:[#allocation2 + $0xa4] sm:$0xf]  ;;  %531 = vst.msk [vmem:[#allocation2 + $0xb4] sm:$0xf] %vm315_vm3, %v507_v5  ;;  %v1574_v25 = vld [vmem:[%s3480_s19 + $0x9c] sm:$0xf] }
  0x65   : > { %1750 = vst.msk [vmem:[#allocation2 + $0xa4] sm:$0xf] %vm315_vm3, %v1744_v31  ;;  %v307_v35 = vld [vmem:[%s3480_s19 + $0x40] sm:$0xf]  ;;  %v1573_v39 = vld [vmem:[%s3480_s19 + $0x98] sm:$0xf] }
  0x66   : > { %3055 = vmatmul.msk.bf16.gmra.mxu3 %vm816_vm4, %v2885_v62  ;;  %1618 = vrot.lane.b32.xlu1 %v1569_v8, %s3438_s30  ;;  %v1570_v8 = vld [vmem:[%s3480_s19 + $0x8c] sm:$0xf]  ;;  %532 = vst.msk [vmem:[#allocation2 + $0xbc] sm:$0xf] %vm315_vm3, %v508_v6  ;;  %v309_v49 = vld [vmem:[%s3480_s19 + $0x48] sm:$0xf] }
  0x67   : > { %3042 = vmatmul.msk.bf16.gmra.mxu1 %vm816_vm4, %v2885_v62  ;;  %v3223_v62 = vor.u32 %v3373_v59, %v3220_v60  ;;  %v3362_v59 = vld [vmem:[%s4980_s2 + $0x14] sm:$0xf0]  ;;  %333 = vst.msk [vmem:[#allocation2 + $0x88] sm:$0xf] %vm315_vm3, %v308_v32  ;;  %v3162_v52 = vld [vmem:[%s4980_s2] sm:$0xf] }
  0x68   : > { %1614 = vrot.lane.b32.xlu2 %v1567_v21, %s3438_s30  ;;  %v1746_v21 = vld [vmem:[%s3485_s23 + $0x10] sm:$0xf]  ;;  %332 = vst.msk [vmem:[#allocation2 + $0x80] sm:$0xf] %vm315_vm3, %v307_v35  ;;  %v3360_v53 = vld [vmem:[%s4980_s2 + $0x4] sm:$0xf0] }
  0x69   : > { %2222 = vmatpush.bf16.msrb.mxu0 %v3223_v62  ;;  %1616 = vrot.lane.b32.xlu0 %v1568_v12, %s3438_s30  ;;  %v3171_v62 = vor.u32 %v3362_v59, %v3170_v58  ;;  %v3163_v54 = vor.u32 %v3360_v53, %v3162_v52  ;;  %v3367_v55 = vld [vmem:[%s4980_s2 + $0x44] sm:$0xf]  ;;  %v3196_v56 = vld [vmem:[%s4980_s2 + $0x48] sm:$0xf0]  ;;  %334 = vst.msk [vmem:[#allocation2 + $0x90] sm:$0xf] %vm315_vm3, %v309_v49 }
  0x6a   : > { %v1577_v58 = vld [vmem:[%s3480_s19 + $0xa8] sm:$0xf]  ;;  %v1515_v59 = vld [vmem:[%s3480_s19 + $0x64] sm:$0xf]  ;;  %v3068_v53 = vld [vmem:[#allocation2 + $0x8] sm:$0xf0] }
  0x6b   : > { %2082 = vmatpush.bf16.msrb.mxu1 %v3171_v62  ;;  %v4002_v26 = vld [vmem:[#allocation2 + $0xb4] sm:$0xf]  ;;  %v1514_v62 = vld [vmem:[%s3480_s19 + $0x60] sm:$0xf]  ;;  %v3335_v52 = vld [vmem:[#allocation2 + $0x4] sm:$0xf] }
  0x6c   : > { %1752 = vst.msk [vmem:[#allocation2 + $0xb4] sm:$0xf] %vm315_vm3, %v1746_v21  ;;  %vm1173_vm6 = vcmask 1046528   ;;  %vm1344_vm7 = vcmask 1045504  }
  0x6d   : > { %2223 = vmatpush.bf16.msrb.mxu0 %v3215_v34  ;;  %v4008_v28 = vld [vmem:[#allocation2 + $0xb8] sm:$0xf0] }
  0x6e   : > { %1624 = vrot.lane.b32.xlu1 %v1572_v57, %s3438_s30  ;;  %v3199_v57 = vor.u32 %v3367_v55, %v3196_v56  ;;  %v2941_v5 = vor.u32 %v4002_v26, %v4008_v28  ;;  %v3377_v26 = vld [vmem:[%s4980_s2 + $0x94] sm:$0xf]  ;;  %v1576_v28 = vld [vmem:[%s3480_s19 + $0xa4] sm:$0xf] }
  0x6f   : > { %2083 = vmatpush.bf16.msrb.mxu1 %v3163_v54 }
  0x70   : > { %1620 = vrot.lane.b32.xlu2 %v1570_v8, %s3438_s30 }
  0x71   : > { %1622 = vrot.lane.b32.xlu0 %v1571_v33, %s3438_s30 }
  0x76   : > { %3056 = vmatmul.msk.bf16.gmra.mxu3 %vm816_vm4, %v2893_v40 }
  0x77   : > { %3043 = vmatmul.msk.bf16.gmra.mxu1 %vm816_vm4, %v2893_v40  ;;  %v506_v40 = vld [vmem:[%s3480_s19 + $0x6c] sm:$0xf] }
  0x78   : > { %530 = vst.msk [vmem:[#allocation2 + $0xac] sm:$0xf] %vm315_vm3, %v506_v40  ;;  %1626 = vrot.lane.b32.xlu2 %v1573_v39, %s3438_s30  ;;  %v3188_v39 = vld [vmem:[%s4980_s2 + $0x38] sm:$0xf0] }
  0x79   : > { %v397_v61 = vpop.permute.xlu2 %396  ;;  %1628 = vrot.lane.b32.xlu0 %v1574_v25, %s3438_s30 }
  0x7a   : > { %465 = vst.msk [vmem:[#allocation2 + $0x20] sm:$0xf] %vm460_vm5, %v397_v61 }
  0x7f   : > { %v3931_v48 = vld [vmem:[#allocation2 + $0xa8] sm:$0xf0] }
  0x80   : > { %1751 = vst.msk [vmem:[#allocation2 + $0xac] sm:$0xf] %vm315_vm3, %v1745_v45  ;;  %v2933_v40 = vor.u32 %v3926_v30, %v3931_v48  ;;  %v310_v30 = vld [vmem:[%s3480_s19 + $0x4c] sm:$0xf]  ;;  %1632 = vrot.lane.b32.xlu2 %v1576_v28, %s3438_s30  ;;  %v1689_v28 = vld [vmem:[%s3485_s23 + $0x4] sm:$0xf] }
  0x81   : > { %v2864_v13 = vld [vmem:[#allocation2 + $0x20] sm:$0xf]  ;;  %335 = vst.msk [vmem:[#allocation2 + $0x98] sm:$0xf] %vm315_vm3, %v310_v30  ;;  %1634 = vrot.lane.b32.xlu0 %v1577_v58, %s3438_s30  ;;  %v4137_v58 = vor.u32 %v3335_v52, %v3068_v53 }
  0x82   : > { %v399_v4 = vpop.permute.xlu2 %398 }
  0x83   : > { %466 = vst.msk [vmem:[#allocation2 + $0x28] sm:$0xf] %vm460_vm5, %v399_v4 }
  0x86   : > { %3057 = vmatmul.msk.bf16.gmra.mxu3 %vm816_vm4, %v2901_v2  ;;  %v389_v3 = vpop.permute.xlu0 %388 }
  0x87   : > { %461 = vst.msk [vmem:[#allocation2] sm:$0xf] %vm460_vm5, %v389_v3  ;;  %3044 = vmatmul.msk.bf16.gmra.mxu1 %vm816_vm4, %v2901_v2  ;;  %v301_v3 = vld [vmem:[%s3480_s19 + $0x28] sm:$0xf] }
  0x88   : > { %v393_v9 = vpop.permute.xlu1 %392  ;;  %326 = vst.msk [vmem:[#allocation2 + $0x50] sm:$0xf] %vm315_vm3, %v301_v3 }
  0x89   : > { %463 = vst.msk [vmem:[#allocation2 + $0x10] sm:$0xf] %vm460_vm5, %v393_v9  ;;  %v3369_v9 = vld [vmem:[%s4980_s2 + $0x54] sm:$0xf] }
  0x8a   : > { %v405_v46 = vpop.permute.xlu2 %404  ;;  %v3207_v4 = vor.u32 %v3369_v9, %v3204_v10  ;;  %v3292_v14 = vld [vmem:[#allocation2 + $0x24] sm:$0xf0] }
  0x8b   : > { %469 = vst.msk [vmem:[#allocation2 + $0x40] sm:$0xf] %vm460_vm5, %v405_v46  ;;  %v2865_v18 = vor.u32 %v3292_v14, %v2864_v13  ;;  %v311_v46 = vld [vmem:[%s3480_s19 + $0x50] sm:$0xf]  ;;  %v1578_v14 = vld [vmem:[%s3480_s19 + $0xac] sm:$0xf] }
  0x8c   : > { %2224 = vmatpush.bf16.msrb.mxu0 %v3207_v4  ;;  %336 = vst.msk [vmem:[#allocation2 + $0xa0] sm:$0xf] %vm315_vm3, %v311_v46  ;;  %v313_v4 = vld [vmem:[%s3480_s19 + $0x58] sm:$0xf]  ;;  %v1519_v46 = vld [vmem:[%s3480_s19 + $0x74] sm:$0xf] }
  0x8d   : > { %338 = vst.msk [vmem:[#allocation2 + $0xb0] sm:$0xf] %vm315_vm3, %v313_v4  ;;  %v1521_v4 = vld [vmem:[%s3480_s19 + $0x7c] sm:$0xf] }
  0x8e   : > { %v391_v15 = vpop.permute.xlu0 %390  ;;  %v2848_v22 = vld [vmem:[#allocation2] sm:$0xf]  ;;  %1543 = vst.msk [vmem:[#allocation2 + $0x28] sm:$0xf] %vm315_vm3, %v1519_v46 }
  0x8f   : > { %462 = vst.msk [vmem:[#allocation2 + $0x8] sm:$0xf] %vm460_vm5, %v391_v15  ;;  %v1522_v46 = vld [vmem:[%s3480_s19 + $0x80] sm:$0xf] }
  0x90   : > { %v395_v16 = vpop.permute.xlu1 %394  ;;  %v2856_v43 = vld [vmem:[#allocation2 + $0x10] sm:$0xf]  ;;  %2225 = vmatpush.bf16.msrb.mxu0 %v3199_v57  ;;  %1538 = vst.msk [vmem:[#allocation2] sm:$0xf] %vm315_vm3, %v1514_v62 }
  0x91   : > { %464 = vst.msk [vmem:[#allocation2 + $0x18] sm:$0xf] %vm460_vm5, %v395_v16  ;;  %v305_v16 = vld [vmem:[%s3480_s19 + $0x38] sm:$0xf]  ;;  %v1579_v57 = vld [vmem:[%s3480_s19 + $0xb0] sm:$0xf] }
  0x92   : > { %v411_v2 = vpop.permute.xlu2 %410  ;;  %330 = vst.msk [vmem:[#allocation2 + $0x70] sm:$0xf] %vm315_vm3, %v305_v16  ;;  %v2880_v6 = vld [vmem:[#allocation2 + $0x40] sm:$0xf]  ;;  %1638 = vrot.lane.b32.xlu2 %v1579_v57, %s3438_s30 }
  0x93   : > { %472 = vst.msk [vmem:[#allocation2 + $0x58] sm:$0xf] %vm460_vm5, %v411_v2 }
  0x94   : > { %1546 = vst.msk [vmem:[#allocation2 + $0x40] sm:$0xf] %vm315_vm3, %v1522_v46 }
  0x96   : > { %3058 = vmatmul.msk.bf16.gmra.mxu3 %vm816_vm4, %v2909_v19  ;;  %v3288_v24 = vld [vmem:[#allocation2 + $0x4] sm:$0xf0] }
  0x97   : > { %v2849_v27 = vor.u32 %v3288_v24, %v2848_v22  ;;  %3045 = vmatmul.msk.bf16.gmra.mxu1 %vm816_vm4, %v2909_v19  ;;  %v304_v19 = vld [vmem:[%s3480_s19 + $0x34] sm:$0xf]  ;;  %v1575_v24 = vld [vmem:[%s3480_s19 + $0xa0] sm:$0xf]  ;;  %1539 = vst.msk [vmem:[#allocation2 + $0x8] sm:$0xf] %vm315_vm3, %v1515_v59 }
  0x98   : > { %v403_v37 = vpop.permute.xlu1 %402  ;;  %v3290_v44 = vld [vmem:[#allocation2 + $0x14] sm:$0xf0]  ;;  %v1747_v22 = vld [vmem:[%s3485_s23 + $0x14] sm:$0xf]  ;;  %329 = vst.msk [vmem:[#allocation2 + $0x68] sm:$0xf] %vm315_vm3, %v304_v19  ;;  %1630 = vrot.lane.b32.xlu1 %v1575_v24, %s3438_s30 }
  0x99   : > { %864 = vmatmul.bf16.vlgmr.msra.gmra.mxu0 %v2849_v27  ;;  %1010 = vmatmul.bf16.vlgmr.msra.gmra.mxu2 %v2849_v27  ;;  %468 = vst.msk [vmem:[#allocation2 + $0x38] sm:$0xf] %vm460_vm5, %v403_v37  ;;  %v2857_v47 = vor.u32 %v3290_v44, %v2856_v43  ;;  %v303_v27 = vld [vmem:[%s3480_s19 + $0x30] sm:$0xf]  ;;  %v306_v37 = vld [vmem:[%s3480_s19 + $0x3c] sm:$0xf] }
  0x9a   : > { %v417_v15 = vpop.permute.xlu2 %416  ;;  %1753 = vst.msk [vmem:[#allocation2 + $0xbc] sm:$0xf] %vm315_vm3, %v1747_v22  ;;  %v4090_v19 = vld [vmem:[#allocation2 + $0xc0] sm:$0xff] }
  0x9b   : > { %v401_v38 = vpop.permute.xlu0 %400  ;;  %475 = vst.msk [vmem:[#allocation2 + $0x70] sm:$0xf] %vm460_vm5, %v417_v15  ;;  %v1516_v15 = vld [vmem:[%s3480_s19 + $0x68] sm:$0xf]  ;;  %v656_v21 = vunpack.c.h.b16 %v4090_v19 }
  0x9c   : > { %467 = vst.msk [vmem:[#allocation2 + $0x30] sm:$0xf] %vm460_vm5, %v401_v38 }
  0x9d   : > { %328 = vst.msk [vmem:[#allocation2 + $0x60] sm:$0xf] %vm315_vm3, %v303_v27  ;;  %v3236_v27 = vld [vmem:[%s4980_s2 + $0x98] sm:$0xf0]  ;;  %v682_v32 = vpack.c.b16 %v656_v21, %v656_v21  ;;  %v3363_v21 = vld [vmem:[%s4980_s2 + $0x24] sm:$0xf] }
  0x9e   : > { %331 = vst.msk [vmem:[#allocation2 + $0x78] sm:$0xf] %vm315_vm3, %v306_v37  ;;  %v3365_v37 = vld [vmem:[%s4980_s2 + $0x34] sm:$0xf] }
  0x9f   : > { %1540 = vst.msk [vmem:[#allocation2 + $0x10] sm:$0xf] %vm315_vm3, %v1516_v15 }
  0xa0   : > { %v409_v1 = vpop.permute.xlu1 %408  ;;  %v3294_v43 = vld [vmem:[#allocation2 + $0x34] sm:$0xf0]  ;;  %1636 = vrot.lane.b32.xlu1 %v1578_v14, %s3438_s30 }
  0xa1   : > { %471 = vst.msk [vmem:[#allocation2 + $0x50] sm:$0xf] %vm460_vm5, %v409_v1  ;;  %v312_v1 = vld [vmem:[%s3480_s19 + $0x54] sm:$0xf] }
  0xa2   : > { %v423_v33 = vpop.permute.xlu2 %422  ;;  %337 = vst.msk [vmem:[#allocation2 + $0xa8] sm:$0xf] %vm315_vm3, %v312_v1 }
  0xa3   : > { %v407_v60 = vpop.permute.xlu0 %406  ;;  %478 = vst.msk [vmem:[#allocation2 + $0x88] sm:$0xf] %vm460_vm5, %v423_v33  ;;  %v3239_v33 = vor.u32 %v3377_v26, %v3236_v27  ;;  %v1582_v27 = vld [vmem:[%s3480_s19 + $0xbc] sm:$0xf] }
  0xa4   : > { %v3923_v42 = vpop.f32.mrf.mxu1  ;;  %470 = vst.msk [vmem:[#allocation2 + $0x48] sm:$0xf] %vm460_vm5, %v407_v60  ;;  %1644 = vrot.lane.b32.xlu2 %v1582_v27, %s3438_s30 }
  0xa5   : > { %2301 = vmatpush.bf16.msrb.mxu2 %v3239_v33  ;;  %1545 = vst.msk [vmem:[#allocation2 + $0x38] sm:$0xf] %vm315_vm3, %v1521_v4  ;;  %v3228_v4 = vld [vmem:[%s4980_s2 + $0x88] sm:$0xf0] }
  0xa6   : > { %3059 = vmatmul.msk.bf16.gmra.mxu3 %vm816_vm4, %v2917_v41 }
  0xa7   : > { %3046 = vmatmul.msk.bf16.gmra.mxu1 %vm816_vm4, %v2917_v41  ;;  %v2872_v41 = vld [vmem:[#allocation2 + $0x30] sm:$0xf] }
  0xa8   : > { %v415_v17 = vpop.permute.xlu1 %414  ;;  %v2873_v31 = vor.u32 %v3294_v43, %v2872_v41  ;;  %v2888_v35 = vld [vmem:[#allocation2 + $0x50] sm:$0xf]  ;;  %v3191_v41 = vor.u32 %v3365_v37, %v3188_v39 }
  0xa9   : > { %v3936_v50 = vpop.f32.mrf.mxu3  ;;  %869 = vmatmul.bf16.gmra.mxu0 %v2857_v47  ;;  %1015 = vmatmul.bf16.gmra.mxu2 %v2857_v47  ;;  %474 = vst.msk [vmem:[#allocation2 + $0x68] sm:$0xf] %vm460_vm5, %v415_v17  ;;  %v314_v17 = vld [vmem:[%s3480_s19 + $0x5c] sm:$0xf] }
  0xaa   : > { %v429_v45 = vpop.permute.xlu2 %428  ;;  %339 = vst.msk [vmem:[#allocation2 + $0xb8] sm:$0xf] %vm315_vm3, %v314_v17  ;;  %2226 = vmatpush.bf16.msrb.mxu0 %v3191_v41 }
  0xab   : > { %v413_v20 = vpop.permute.xlu0 %412  ;;  %481 = vst.msk [vmem:[#allocation2 + $0xa0] sm:$0xf] %vm460_vm5, %v429_v45  ;;  %v3296_v9 = vld [vmem:[#allocation2 + $0x44] sm:$0xf0]  ;;  %v1580_v45 = vld [vmem:[%s3480_s19 + $0xb4] sm:$0xf] }
  0xac   : > { %v3959_v61 = vpop.f32.mrf.mxu1  ;;  %473 = vst.msk [vmem:[#allocation2 + $0x60] sm:$0xf] %vm460_vm5, %v413_v20  ;;  %1640 = vrot.lane.b32.xlu0 %v1580_v45, %s3438_s30  ;;  %v3084_v45 = vld [vmem:[#allocation2 + $0x28] sm:$0xf0] }
  0xb0   : > { %v421_v34 = vpop.permute.xlu1 %420 }
  0xb1   : > { %v3971_v7 = vpop.f32.mrf.mxu3  ;;  %477 = vst.msk [vmem:[#allocation2 + $0x80] sm:$0xf] %vm460_vm5, %v421_v34 }
  0xb2   : > { %v1607_v63 = vpop.permute.xlu2 %1606 }
  0xb3   : > { %v419_v36 = vpop.permute.xlu0 %418  ;;  %1668 = vst.msk [vmem:[#allocation2 + $0x8] sm:$0xf] %vm460_vm5, %v1607_v63  ;;  %v2896_v63 = vld [vmem:[#allocation2 + $0x60] sm:$0xf] }
  0xb4   : > { %v3986_v12 = vpop.f32.mrf.mxu1  ;;  %476 = vst.msk [vmem:[#allocation2 + $0x78] sm:$0xf] %vm460_vm5, %v419_v36  ;;  %v3298_v36 = vld [vmem:[#allocation2 + $0x54] sm:$0xf0] }
  0xb6   : > { %3060 = vmatmul.msk.bf16.gmra.mxu3 %vm816_vm4, %v2925_v11 }
  0xb7   : > { %3047 = vmatmul.msk.bf16.gmra.mxu1 %vm816_vm4, %v2925_v11  ;;  %v2881_v11 = vor.u32 %v3296_v9, %v2880_v6  ;;  %v3337_v9 = vld [vmem:[#allocation2 + $0x14] sm:$0xf] }
  0xb8   : > { %v427_v47 = vpop.permute.xlu1 %426 }
  0xb9   : > { %v3997_v23 = vpop.f32.mrf.mxu3  ;;  %874 = vmatmul.bf16.gmra.mxu0 %v2865_v18  ;;  %1020 = vmatmul.bf16.gmra.mxu2 %v2865_v18  ;;  %480 = vst.msk [vmem:[#allocation2 + $0x98] sm:$0xf] %vm460_vm5, %v427_v47  ;;  %v1517_v18 = vld [vmem:[%s3480_s19 + $0x6c] sm:$0xf]  ;;  %v1518_v47 = vld [vmem:[%s3480_s19 + $0x70] sm:$0xf] }
  0xba   : > { %v1609_v16 = vpop.permute.xlu2 %1608  ;;  %1541 = vst.msk [vmem:[#allocation2 + $0x18] sm:$0xf] %vm315_vm3, %v1517_v18  ;;  %v3336_v55 = vld [vmem:[#allocation2 + $0x4] sm:$0xf0] }
  0xbb   : > { %v425_v48 = vpop.permute.xlu0 %424  ;;  %1669 = vst.msk [vmem:[#allocation2 + $0x10] sm:$0xf] %vm460_vm5, %v1609_v16 }
  0xbc   : > { %v4011_v29 = vpop.f32.mrf.mxu1  ;;  %479 = vst.msk [vmem:[#allocation2 + $0x90] sm:$0xf] %vm460_vm5, %v425_v48 }
  0xbd   : > { %1542 = vst.msk [vmem:[#allocation2 + $0x20] sm:$0xf] %vm315_vm3, %v1518_v47  ;;  %v1523_v47 = vld [vmem:[%s3480_s19 + $0x84] sm:$0xf] }
  0xbe   : > { %1547 = vst.msk [vmem:[#allocation2 + $0x48] sm:$0xf] %vm315_vm3, %v1523_v47 }
  0xc0   : > { %v1605_v0 = vpop.permute.xlu1 %1604 }
  0xc1   : > { %v4021_v38 = vpop.f32.mrf.mxu3  ;;  %1667 = vst.msk [vmem:[#allocation2] sm:$0xf] %vm460_vm5, %v1605_v0  ;;  %v3300_v0 = vld [vmem:[#allocation2 + $0x64] sm:$0xf0] }
  0xc2   : > { %v1615_v48 = vpop.permute.xlu2 %1614  ;;  %v2897_v1 = vor.u32 %v3300_v0, %v2896_v63  ;;  %v3074_v14 = vld [vmem:[#allocation2 + $0x10] sm:$0xf]  ;;  %v2912_v0 = vld [vmem:[#allocation2 + $0x80] sm:$0xf] }
  0xc3   : > { %v431_v2 = vpop.permute.xlu0 %430  ;;  %1672 = vst.msk [vmem:[#allocation2 + $0x28] sm:$0xf] %vm460_vm5, %v1615_v48 }
  0xc4   : > { %v4030_v44 = vpop.f32.mrf.mxu1  ;;  %482 = vst.msk [vmem:[#allocation2 + $0xa8] sm:$0xf] %vm460_vm5, %v431_v2 }
  0xc6   : > { %3061 = vmatmul.msk.bf16.gmra.mxu3 %vm816_vm4, %v2933_v40 }
  0xc7   : > { %3048 = vmatmul.msk.bf16.gmra.mxu1 %vm816_vm4, %v2933_v40  ;;  %v2889_v40 = vor.u32 %v3298_v36, %v2888_v35  ;;  %v2904_v35 = vld [vmem:[#allocation2 + $0x70] sm:$0xf]  ;;  %v3302_v36 = vld [vmem:[#allocation2 + $0x74] sm:$0xf0] }
  0xc8   : > { %v435_v22 = vpop.permute.xlu1 %434  ;;  %v3066_v54 = vld [vmem:[#allocation2] sm:$0xf]  ;;  %v2905_v37 = vor.u32 %v3302_v36, %v2904_v35  ;;  %v3092_v36 = vld [vmem:[#allocation2 + $0x38] sm:$0xf0] }
  0xc9   : > { %v4040_v51 = vpop.f32.mrf.mxu3  ;;  %879 = vmatmul.bf16.gmra.mxu0 %v2873_v31  ;;  %1025 = vmatmul.bf16.gmra.mxu2 %v2873_v31  ;;  %484 = vst.msk [vmem:[#allocation2 + $0xb8] sm:$0xf] %vm460_vm5, %v435_v22  ;;  %v1581_v31 = vld [vmem:[%s3480_s19 + $0xb8] sm:$0xf]  ;;  %v4140_v59 = vor.u32 %v3336_v55, %v3066_v54  ;;  %v3180_v22 = vld [vmem:[%s4980_s2 + $0x28] sm:$0xf0] }
  0xca   : > { %1642 = vrot.lane.b32.xlu1 %v1581_v31, %s3438_s30  ;;  %v3183_v26 = vor.u32 %v3363_v21, %v3180_v22  ;;  %v3339_v31 = vld [vmem:[#allocation2 + $0x24] sm:$0xf]  ;;  %v1621_v52 = vpop.permute.xlu2 %1620 }
  0xcb   : > { %v433_v8 = vpop.permute.xlu0 %432  ;;  %1675 = vst.msk [vmem:[#allocation2 + $0x40] sm:$0xf] %vm460_vm5, %v1621_v52  ;;  %v4192_v55 = vor.u32 %v3339_v31, %v3084_v45 }
  0xcc   : > { %v4059_v60 = vpop.f32.mrf.mxu1  ;;  %483 = vst.msk [vmem:[#allocation2 + $0xb0] sm:$0xf] %vm460_vm5, %v433_v8  ;;  %v1520_v8 = vld [vmem:[%s3480_s19 + $0x78] sm:$0xf]  ;;  %2227 = vmatpush.bf16.msrb.mxu0 %v3183_v26 }
  0xcd   : > { %1544 = vst.msk [vmem:[#allocation2 + $0x30] sm:$0xf] %vm315_vm3, %v1520_v8 }
  0xd0   : > { %v1613_v49 = vpop.permute.xlu1 %1612 }
  0xd1   : > { %v4069_v3 = vpop.f32.mrf.mxu3  ;;  %1671 = vst.msk [vmem:[#allocation2 + $0x20] sm:$0xf] %vm460_vm5, %v1613_v49  ;;  %v3340_v49 = vld [vmem:[#allocation2 + $0x24] sm:$0xf0] }
  0xd2   : > { %1696 = vrot.lane.b32.xlu1 %v1689_v28, %s3438_s30  ;;  %v3341_v28 = vld [vmem:[#allocation2 + $0x34] sm:$0xf]  ;;  %v1627_v46 = vpop.permute.xlu2 %1626 }
  0xd3   : > { %v1611_v24 = vpop.permute.xlu0 %1610  ;;  %v4233_v52 = vor.u32 %v3341_v28, %v3092_v36 }
  0xd4   : > { %v4075_v10 = vpop.f32.mrf.mxu1  ;;  %1670 = vst.msk [vmem:[#allocation2 + $0x18] sm:$0xf] %vm460_vm5, %v1611_v24 }
  0xd6   : > { %3062 = vmatmul.msk.bf16.gmra.mxu3 %vm816_vm4, %v2941_v5 }
  0xd7   : > { %3049 = vmatmul.msk.bf16.gmra.mxu1 %vm816_vm4, %v2941_v5  ;;  %v1688_v5 = vld [vmem:[%s3485_s23] sm:$0xf] }
  0xd8   : > { %1694 = vrot.lane.b32.xlu0 %v1688_v5, %s3438_s30  ;;  %v1619_v16 = vpop.permute.xlu1 %1618  ;;  %v3082_v48 = vld [vmem:[#allocation2 + $0x20] sm:$0xf] }
  0xd9   : > { %v4082_v13 = vpop.f32.mrf.mxu3  ;;  %884 = vmatmul.bf16.gmra.mxu0 %v2881_v11  ;;  %1030 = vmatmul.bf16.gmra.mxu2 %v2881_v11  ;;  %v3076_v11 = vld [vmem:[#allocation2 + $0x18] sm:$0xf0]  ;;  %1674 = vst.msk [vmem:[#allocation2 + $0x38] sm:$0xf] %vm460_vm5, %v1619_v16  ;;  %v4195_v57 = vor.u32 %v3340_v49, %v3082_v48 }
  0xda   : > { %v4165_v24 = vor.u32 %v3337_v9, %v3076_v11  ;;  %v3375_v11 = vld [vmem:[%s4980_s2 + $0x84] sm:$0xf]  ;;  %v3172_v16 = vld [vmem:[%s4980_s2 + $0x18] sm:$0xf0] }
  0xdb   : > { %v3338_v15 = vld [vmem:[#allocation2 + $0x14] sm:$0xf0]  ;;  %v1617_v17 = vpop.permute.xlu0 %1616  ;;  %v3231_v8 = vor.u32 %v3375_v11, %v3228_v4 }
  0xdc   : > { %v4093_v20 = vpop.f32.mrf.mxu1  ;;  %1673 = vst.msk [vmem:[#allocation2 + $0x30] sm:$0xf] %vm460_vm5, %v1617_v17  ;;  %v3306_v11 = vld [vmem:[#allocation2 + $0x94] sm:$0xf0] }
  0xdd   : > { %2302 = vmatpush.bf16.msrb.mxu2 %v3231_v8 }
  0xe0   : > { %v3342_v45 = vld [vmem:[#allocation2 + $0x34] sm:$0xf0]  ;;  %v1625_v47 = vpop.permute.xlu1 %1624 }
  0xe1   : > { %v4100_v25 = vpop.f32.mrf.mxu3 }
  0xe3   : > { %v1623_v53 = vpop.permute.xlu0 %1622  ;;  %v3090_v31 = vld [vmem:[#allocation2 + $0x30] sm:$0xf] }
  0xe4   : > { %v4110_v34 = vpop.f32.mrf.mxu1  ;;  %1676 = vst.msk [vmem:[#allocation2 + $0x48] sm:$0xf] %vm460_vm5, %v1623_v53 }
  0xe6   : > { %3063 = vmatmul.msk.bf16.gmra.mxu3 %vm816_vm4, %v682_v32 }
  0xe7   : > { %3050 = vmatmul.msk.bf16.gmra.mxu1 %vm816_vm4, %v682_v32  ;;  %v4170_v32 = vor.u32 %v3338_v15, %v3074_v14  ;;  %v3361_v15 = vld [vmem:[%s4980_s2 + $0x14] sm:$0xf] }
  0xe8   : > { %v3175_v17 = vor.u32 %v3361_v15, %v3172_v16 }
  0xe9   : > { %v4120_v43 = vpop.f32.mrf.mxu3  ;;  %889 = vmatmul.bf16.gmra.mxu0 %v2889_v40  ;;  %1035 = vmatmul.bf16.gmra.mxu2 %v2889_v40  ;;  %v1690_v40 = vld [vmem:[%s3485_s23 + $0x8] sm:$0xf] }
  0xea   : > { %1698 = vrot.lane.b32.xlu2 %v1690_v40, %s3438_s30  ;;  %2228 = vmatpush.bf16.msrb.mxu0 %v3175_v17  ;;  %v1524_v40 = vld [vmem:[%s3480_s19 + $0x88] sm:$0xf] }
  0xeb   : > { %1548 = vst.msk [vmem:[#allocation2 + $0x50] sm:$0xf] %vm315_vm3, %v1524_v40 }
  0xec   : > { %v4130_v30 = vpop.f32.mrf.mxu1  ;;  %1677 = vst.msk [vmem:[#allocation2 + $0x50] sm:$0xf] %vm460_vm5, %v1625_v47 }
  0xf1   : > { %v4134_v56 = vpop.f32.mrf.mxu3 }
  0xf4   : > { %v4142_v62 = vpop.f32.mrf.mxu1 }
  0xf6   : > { %3256 = vmatmul.msk.bf16.vlgmr.msrb.gmra.mxu3 %vm816_vm4, %v4137_v58 }
  0xf7   : > { %2084 = vmatmul.bf16.vlgmr.msrb.gmra.mxu1 %v4140_v59 }
  0xf9   : > { %v4147_v2 = vpop.f32.mrf.mxu3  ;;  %894 = vmatmul.bf16.gmra.mxu0 %v2897_v1  ;;  %1040 = vmatmul.bf16.gmra.mxu2 %v2897_v1  ;;  %v3304_v1 = vld [vmem:[#allocation2 + $0x84] sm:$0xf0] }
  0xfa   : > { %v2913_v9 = vor.u32 %v3304_v1, %v2912_v0  ;;  %v4238_v0 = vor.u32 %v3342_v45, %v3090_v31  ;;  %v3343_v31 = vld [vmem:[#allocation2 + $0x44] sm:$0xf]  ;;  %v3100_v45 = vld [vmem:[#allocation2 + $0x48] sm:$0xf0] }
  0xfc   : > { %v4151_v6 = vpop.f32.mrf.mxu1 }
 0x101   : > { %v4156_v18 = vpop.f32.mrf.mxu3 }
 0x104   : > { %v4175_v33 = vpop.f32.mrf.mxu1 }
 0x106   : > { %3257 = vmatmul.msk.bf16.gmra.mxu3 %vm816_vm4, %v4165_v24 }
 0x107   : > { %2089 = vmatmul.bf16.gmra.mxu1 %v4170_v32 }
 0x109   : > { %v4180_v39 = vpop.f32.mrf.mxu3  ;;  %899 = vmatmul.bf16.gmra.mxu0 %v2905_v37  ;;  %1045 = vmatmul.bf16.gmra.mxu2 %v2905_v37  ;;  %v1525_v37 = vld [vmem:[%s3480_s19 + $0x8c] sm:$0xf] }
 0x10a   : > { %1549 = vst.msk [vmem:[#allocation2 + $0x58] sm:$0xf] %vm315_vm3, %v1525_v37 }
 0x10b   : > { %1678 = vst.msk [vmem:[#allocation2 + $0x58] sm:$0xf] %vm460_vm5, %v1627_v46 }
 0x10c   : > { %v4184_v41 = vpop.f32.mrf.mxu1 }
 0x111   : > { %v4189_v54 = vpop.f32.mrf.mxu3 }
 0x114   : > { %v4198_v63 = vpop.f32.mrf.mxu1 }
 0x116   : > { %3258 = vmatmul.msk.bf16.gmra.mxu3 %vm816_vm4, %v4192_v55  ;;  %v865_v5 = vpop.f32.mrf.mxu0 }
 0x117   : > { %2094 = vmatmul.bf16.gmra.mxu1 %v4195_v57  ;;  %v4220_v26 = vadd.f32 %v3923_v42, %v865_v5 }
 0x119   : > { %v4209_v14 = vpop.f32.mrf.mxu3  ;;  %904 = vmatmul.bf16.gmra.mxu0 %v2913_v9  ;;  %1050 = vmatmul.bf16.gmra.mxu2 %v2913_v9  ;;  %v1174_v48 = vrot.slane %v4220_v26, 1  ;;  %v2920_v9 = vld [vmem:[#allocation2 + $0x90] sm:$0xf] }
 0x11a   : > { %v2921_v17 = vor.u32 %v3306_v11, %v2920_v9  ;;  %v1631_v9 = vpop.permute.xlu1 %1630 }
 0x11c   : > { %v1011_v21 = vpop.f32.mrf.mxu2  ;;  %v4217_v22 = vpop.f32.mrf.mxu1 }
 0x11e   : > { %v867_v27 = vpop.f32.mrf.mxu0 }
 0x11f   : > { %v4223_v35 = vadd.f32 %v3959_v61, %v867_v27  ;;  %v1085_v61 = vadd.f32 %v3936_v50, %v1011_v21 }
 0x121   : > { %v1175_v42 = vrot.slane %v4223_v35, 1  ;;  %v4230_v49 = vpop.f32.mrf.mxu3  ;;  %v1345_v50 = vrot.slane %v1085_v61, 2  ;;  %v1526_v61 = vld [vmem:[%s3480_s19 + $0x90] sm:$0xf] }
 0x122   : > { %1550 = vst.msk [vmem:[#allocation2 + $0x60] sm:$0xf] %vm315_vm3, %v1526_v61  ;;  %v3164_v61 = vld [vmem:[%s4980_s2 + $0x8] sm:$0xf0] }
 0x123   : > { %v1176_v53 = vsel %vm1173_vm6, %v1174_v48, %v1175_v42  ;;  %v1527_v48 = vld [vmem:[%s3480_s19 + $0x94] sm:$0xf] }
 0x124   : > { %v1013_v1 = vpop.f32.mrf.mxu2  ;;  %1223 = vrot.lane.b32.xlu0 %v1176_v53, %s3438_s30  ;;  %v4242_v5 = vpop.f32.mrf.mxu1  ;;  %v3098_v53 = vld [vmem:[#allocation2 + $0x40] sm:$0xf]  ;;  %1551 = vst.msk [vmem:[#allocation2 + $0x68] sm:$0xf] %vm315_vm3, %v1527_v48  ;;  %v3359_v48 = vld [vmem:[%s4980_s2 + $0x4] sm:$0xf] }
 0x125   : > { %v1087_v4 = vadd.f32 %v3971_v7, %v1013_v1  ;;  %v3344_v1 = vld [vmem:[#allocation2 + $0x44] sm:$0xf0]  ;;  %1680 = vst.msk [vmem:[#allocation2 + $0x68] sm:$0xf] %vm460_vm5, %v1631_v9 }
 0x126   : > { %3259 = vmatmul.msk.bf16.gmra.mxu3 %vm816_vm4, %v4233_v52  ;;  %v870_v8 = vpop.f32.mrf.mxu0 }
 0x127   : > { %v1346_v15 = vrot.slane %v1087_v4, 2  ;;  %v4248_v16 = vadd.f32 %v3986_v12, %v870_v8  ;;  %2099 = vmatmul.bf16.gmra.mxu1 %v4238_v0  ;;  %v4275_v8 = vor.u32 %v3343_v31, %v3100_v45 }
 0x129   : > { %v1177_v21 = vrot.slane %v4248_v16, 1  ;;  %v4252_v27 = vpop.f32.mrf.mxu3  ;;  %909 = vmatmul.bf16.gmra.mxu0 %v2921_v17  ;;  %1055 = vmatmul.bf16.gmra.mxu2 %v2921_v17  ;;  %v4255_v7 = vsel %vm1344_vm7, %v1345_v50, %v1346_v15  ;;  %v4279_v50 = vor.u32 %v3344_v1, %v3098_v53 }
 0x12b   : > { %v1178_v28 = vsel %vm1173_vm6, %v1175_v42, %v1177_v21  ;;  %v1629_v42 = vpop.permute.xlu0 %1628 }
 0x12c   : > { %v1016_v36 = vpop.f32.mrf.mxu2  ;;  %1225 = vrot.lane.b32.xlu1 %v1178_v28, %s3438_s30  ;;  %v4259_v12 = vpop.f32.mrf.mxu1  ;;  %1679 = vst.msk [vmem:[#allocation2 + $0x60] sm:$0xf] %vm460_vm5, %v1629_v42 }
 0x12d   : > { %v1090_v37 = vadd.f32 %v3997_v23, %v1016_v36  ;;  %v2928_v36 = vld [vmem:[#allocation2 + $0xa0] sm:$0xf] }
 0x12e   : > { %v872_v40 = vpop.f32.mrf.mxu0 }
 0x12f   : > { %v1348_v46 = vrot.slane %v1090_v37, 2  ;;  %v4263_v47 = vadd.f32 %v4011_v29, %v872_v40  ;;  %v3308_v37 = vld [vmem:[#allocation2 + $0xa4] sm:$0xf0] }
 0x130   : > { %v2929_v45 = vor.u32 %v3308_v37, %v2928_v36  ;;  %v3345_v37 = vld [vmem:[#allocation2 + $0x54] sm:$0xf] }
 0x131   : > { %v1179_v11 = vrot.slane %v4263_v47, 1  ;;  %v4269_v4 = vpop.f32.mrf.mxu3  ;;  %v4273_v23 = vsel %vm1344_vm7, %v1346_v15, %v1348_v46 }
 0x133   : > { %v1180_v29 = vsel %vm1173_vm6, %v1177_v21, %v1179_v11 }
 0x134   : > { %v1018_v17 = vpop.f32.mrf.mxu2  ;;  %1227 = vrot.lane.b32.xlu2 %v1180_v29, %s3438_s30  ;;  %v4283_v28 = vpop.f32.mrf.mxu1 }
 0x135   : > { %v1092_v15 = vadd.f32 %v4021_v38, %v1018_v17  ;;  %v3167_v38 = vor.u32 %v3359_v48, %v3164_v61  ;;  %v3106_v61 = vld [vmem:[#allocation2 + $0x50] sm:$0xf] }
 0x136   : > { %3260 = vmatmul.msk.bf16.gmra.mxu3 %vm816_vm4, %v4275_v8  ;;  %v875_v40 = vpop.f32.mrf.mxu0 }
 0x137   : > { %v1350_v31 = vrot.slane %v1092_v15, 2  ;;  %v4289_v21 = vadd.f32 %v4030_v44, %v875_v40  ;;  %2104 = vmatmul.bf16.gmra.mxu1 %v4279_v50  ;;  %2229 = vmatpush.bf16.msrb.mxu0 %v3167_v38  ;;  %v3108_v15 = vld [vmem:[#allocation2 + $0x58] sm:$0xf0]  ;;  %v3346_v38 = vld [vmem:[#allocation2 + $0x54] sm:$0xf0] }
 0x139   : > { %4998 = vst [vmem:[#allocation3_spill] sm:$0xff] %v4289_v21  ;;  %v1181_v53 = vrot.slane %v4289_v21, 1  ;;  %v4299_v1 = vpop.f32.mrf.mxu3  ;;  %914 = vmatmul.bf16.gmra.mxu0 %v2929_v45  ;;  %1060 = vmatmul.bf16.gmra.mxu2 %v2929_v45  ;;  %v4302_v44 = vsel %vm1344_vm7, %v1348_v46, %v1350_v31  ;;  %v1528_v45 = vld [vmem:[%s3480_s19 + $0x98] sm:$0xf]  ;;  %v1529_v46 = vld [vmem:[%s3480_s19 + $0x9c] sm:$0xf]  ;;  %v1633_v21 = vpop.permute.xlu2 %1632 }
 0x13a   : > { %1552 = vst.msk [vmem:[#allocation2 + $0x70] sm:$0xf] %vm315_vm3, %v1528_v45 }
 0x13b   : > { %v1182_v9 = vsel %vm1173_vm6, %v1179_v11, %v1181_v53  ;;  %v1635_v11 = vpop.permute.xlu0 %1634  ;;  %1681 = vst.msk [vmem:[#allocation2 + $0x70] sm:$0xf] %vm460_vm5, %v1633_v21  ;;  %v3310_v21 = vld [vmem:[#allocation2 + $0xb4] sm:$0xf0] }
 0x13c   : > { %v1021_v42 = vpop.f32.mrf.mxu2  ;;  %1229 = vrot.lane.b32.xlu0 %v1182_v9, %s3438_s30  ;;  %v4306_v29 = vpop.f32.mrf.mxu1  ;;  %1553 = vst.msk [vmem:[#allocation2 + $0x78] sm:$0xf] %vm315_vm3, %v1529_v46 }
 0x13d   : > { %4999 = vst [vmem:[#allocation4_spill] sm:$0xff] %v4306_v29  ;;  %v1095_v17 = vadd.f32 %v4040_v51, %v1021_v42  ;;  %v4322_v42 = vor.u32 %v3345_v37, %v3108_v15 }
 0x13e   : > { %v877_v36 = vpop.f32.mrf.mxu0  ;;  %1682 = vst.msk [vmem:[#allocation2 + $0x78] sm:$0xf] %vm460_vm5, %v1635_v11 }
 0x13f   : > { %v1352_v40 = vrot.slane %v1095_v17, 2  ;;  %v4310_v48 = vadd.f32 %v4059_v60, %v877_v36  ;;  %5001 = vst [vmem:[#allocation6_spill] sm:$0xff] %v4322_v42  ;;  %v4326_v17 = vor.u32 %v3346_v38, %v3106_v61 }
 0x141   : > { %v1183_v9 = vrot.slane %v4310_v48, 1  ;;  %v4316_v29 = vpop.f32.mrf.mxu3  ;;  %v4320_v51 = vsel %vm1344_vm7, %v1350_v31, %v1352_v40  ;;  %5002 = vst [vmem:[#allocation7_spill] sm:$0xff] %v4326_v17 }
 0x142   : > { %5000 = vst [vmem:[#allocation5_spill] sm:$0xff] %v4316_v29  ;;  %v2936_v29 = vld [vmem:[#allocation2 + $0xb0] sm:$0xf] }
 0x143   : > { %v1184_v60 = vsel %vm1173_vm6, %v1181_v53, %v1183_v9  ;;  %v2937_v46 = vor.u32 %v3310_v21, %v2936_v29  ;;  %v3347_v21 = vld [vmem:[#allocation2 + $0x64] sm:$0xf] }
 0x144   : > { %v1023_v36 = vpop.f32.mrf.mxu2  ;;  %1231 = vrot.lane.b32.xlu1 %v1184_v60, %s3438_s30  ;;  %v4330_v45 = vpop.f32.mrf.mxu1 }
 0x145   : > { %v1097_v31 = vadd.f32 %v4069_v3, %v1023_v36 }
 0x146   : > { %3261 = vmatmul.msk.bf16.gmra.mxu3 %vm816_vm4, %v4322_v42  ;;  %v880_v37 = vpop.f32.mrf.mxu0  ;;  %v3348_v42 = vld [vmem:[#allocation2 + $0x64] sm:$0xf0] }
 0x147   : > { %v1354_v15 = vrot.slane %v1097_v31, 2  ;;  %v4336_v53 = vadd.f32 %v4075_v10, %v880_v37  ;;  %2109 = vmatmul.bf16.gmra.mxu1 %v4326_v17  ;;  %v3116_v31 = vld [vmem:[#allocation2 + $0x68] sm:$0xf0]  ;;  %v1639_v17 = vpop.permute.xlu2 %1638 }
 0x149   : > { %5003 = vst [vmem:[#allocation8_spill] sm:$0xff] %v4336_v53  ;;  %v1185_v61 = vrot.slane %v4336_v53, 1  ;;  %v4340_v38 = vpop.f32.mrf.mxu3  ;;  %919 = vmatmul.bf16.gmra.mxu0 %v2937_v46  ;;  %1065 = vmatmul.bf16.gmra.mxu2 %v2937_v46  ;;  %v4343_v3 = vsel %vm1344_vm7, %v1352_v40, %v1354_v15  ;;  %v1531_v46 = vld [vmem:[%s3480_s19 + $0xa4] sm:$0xf]  ;;  %v3114_v40 = vld [vmem:[#allocation2 + $0x60] sm:$0xf] }
 0x14a   : > { %5004 = vst [vmem:[#allocation9_spill] sm:$0xff] %v4340_v38  ;;  %v1530_v38 = vld [vmem:[%s3480_s19 + $0xa0] sm:$0xf] }
 0x14b   : > { %v1186_v11 = vsel %vm1173_vm6, %v1183_v9, %v1185_v61  ;;  %1555 = vst.msk [vmem:[#allocation2 + $0x88] sm:$0xf] %vm315_vm3, %v1531_v46  ;;  %v1637_v9 = vpop.permute.xlu1 %1636 }
 0x14c   : > { %v1026_v60 = vpop.f32.mrf.mxu2  ;;  %1233 = vrot.lane.b32.xlu2 %v1186_v11, %s3438_s30  ;;  %v4347_v10 = vpop.f32.mrf.mxu1  ;;  %1684 = vst.msk [vmem:[#allocation2 + $0x88] sm:$0xf] %vm460_vm5, %v1639_v17 }
 0x14d   : > { %5005 = vst [vmem:[#allocation10_spill] sm:$0xff] %v4347_v10  ;;  %v1100_v29 = vadd.f32 %v4082_v13, %v1026_v60  ;;  %v655_v13 = vunpack.c.l.b16 %v4090_v19 }
 0x14e   : > { %v882_v36 = vpop.f32.mrf.mxu0  ;;  %1554 = vst.msk [vmem:[#allocation2 + $0x80] sm:$0xf] %vm315_vm3, %v1530_v38 }
 0x14f   : > { %v1356_v37 = vrot.slane %v1100_v29, 2  ;;  %v4351_v53 = vadd.f32 %v4093_v20, %v882_v36  ;;  %v4364_v20 = vor.u32 %v3347_v21, %v3116_v31  ;;  %v4368_v36 = vor.u32 %v3348_v42, %v3114_v40  ;;  %1683 = vst.msk [vmem:[#allocation2 + $0x80] sm:$0xf] %vm460_vm5, %v1637_v9 }
 0x150   : > { %v681_v17 = vpack.c.b16 %v655_v13, %v655_v13 }
 0x151   : > { %5006 = vst [vmem:[#allocation11_spill] sm:$0xff] %v4351_v53  ;;  %v1187_v11 = vrot.slane %v4351_v53, 1  ;;  %v4357_v10 = vpop.f32.mrf.mxu3  ;;  %v4362_v60 = vsel %vm1344_vm7, %v1354_v15, %v1356_v37 }
 0x152   : > { %5007 = vst [vmem:[#allocation12_spill] sm:$0xff] %v4364_v20 }
 0x153   : > { %v1188_v29 = vsel %vm1173_vm6, %v1185_v61, %v1187_v11  ;;  %5008 = vst [vmem:[#allocation13_spill] sm:$0xff] %v4368_v36 }
 0x154   : > { %v1028_v46 = vpop.f32.mrf.mxu2  ;;  %1235 = vrot.lane.b32.xlu0 %v1188_v29, %s3438_s30  ;;  %v4372_v53 = vpop.f32.mrf.mxu1  ;;  %v3349_v29 = vld [vmem:[#allocation2 + $0x74] sm:$0xf] }
 0x155   : > { %v1102_v19 = vadd.f32 %v4100_v25, %v1028_v46  ;;  %v3124_v46 = vld [vmem:[#allocation2 + $0x78] sm:$0xf0] }
 0x156   : > { %3262 = vmatmul.msk.bf16.gmra.mxu3 %vm816_vm4, %v4364_v20  ;;  %v885_v15 = vpop.f32.mrf.mxu0  ;;  %v3122_v20 = vld [vmem:[#allocation2 + $0x70] sm:$0xf] }
 0x157   : > { %v1358_v21 = vrot.slane %v1102_v19, 2  ;;  %v4378_v38 = vadd.f32 %v4110_v34, %v885_v15  ;;  %2114 = vmatmul.bf16.gmra.mxu1 %v4368_v36 }
 0x159   : > { %v1189_v42 = vrot.slane %v4378_v38, 1  ;;  %v4382_v61 = vpop.f32.mrf.mxu3  ;;  %924 = vmatmul.bf16.gmra.mxu0 %v681_v17  ;;  %1070 = vmatmul.bf16.gmra.mxu2 %v681_v17  ;;  %v4385_v25 = vsel %vm1344_vm7, %v1356_v37, %v1358_v21  ;;  %v1534_v17 = vld [vmem:[%s3480_s19 + $0xb0] sm:$0xf]  ;;  %v1645_v37 = vpop.permute.xlu2 %1644 }
 0x15a   : > { %5009 = vst [vmem:[#allocation14_spill] sm:$0xff] %v4382_v61  ;;  %v1533_v61 = vld [vmem:[%s3480_s19 + $0xac] sm:$0xf] }
 0x15b   : > { %v1190_v31 = vsel %vm1173_vm6, %v1187_v11, %v1189_v42  ;;  %v3350_v11 = vld [vmem:[#allocation2 + $0x74] sm:$0xf0]  ;;  %1558 = vst.msk [vmem:[#allocation2 + $0xa0] sm:$0xf] %vm315_vm3, %v1534_v17 }
 0x15c   : > { %v1031_v40 = vpop.f32.mrf.mxu2  ;;  %1237 = vrot.lane.b32.xlu1 %v1190_v31, %s3438_s30  ;;  %v4389_v34 = vpop.f32.mrf.mxu1  ;;  %1687 = vst.msk [vmem:[#allocation2 + $0xa0] sm:$0xf] %vm460_vm5, %v1645_v37  ;;  %v4410_v17 = vor.u32 %v3350_v11, %v3122_v20 }
 0x15d   : > { %5010 = vst [vmem:[#allocation15_spill] sm:$0xff] %v4389_v34  ;;  %v1105_v9 = vadd.f32 %v4120_v43, %v1031_v40  ;;  %v1643_v31 = vpop.permute.xlu1 %1642  ;;  %v1532_v43 = vld [vmem:[%s3480_s19 + $0xa8] sm:$0xf] }
 0x15e   : > { %v887_v13 = vpop.f32.mrf.mxu0  ;;  %1557 = vst.msk [vmem:[#allocation2 + $0x98] sm:$0xf] %vm315_vm3, %v1533_v61 }
 0x15f   : > { %v1360_v19 = vrot.slane %v1105_v9, 2  ;;  %v4393_v15 = vadd.f32 %v4130_v30, %v887_v13  ;;  %v4406_v30 = vor.u32 %v3349_v29, %v3124_v46  ;;  %v1641_v9 = vpop.permute.xlu0 %1640  ;;  %1686 = vst.msk [vmem:[#allocation2 + $0x98] sm:$0xf] %vm460_vm5, %v1643_v31  ;;  %v1537_v29 = vld [vmem:[%s3480_s19 + $0xbc] sm:$0xf] }
 0x160   : > { %1556 = vst.msk [vmem:[#allocation2 + $0x90] sm:$0xf] %vm315_vm3, %v1532_v43 }
 0x161   : > { %5011 = vst [vmem:[#allocation16_spill] sm:$0xff] %v4393_v15  ;;  %v1191_v34 = vrot.slane %v4393_v15, 1  ;;  %v4399_v36 = vpop.f32.mrf.mxu3  ;;  %v4404_v40 = vsel %vm1344_vm7, %v1358_v21, %v1360_v19  ;;  %v1699_v46 = vpop.permute.xlu2 %1698 }
 0x162   : > { %1685 = vst.msk [vmem:[#allocation2 + $0x90] sm:$0xf] %vm460_vm5, %v1641_v9 }
 0x163   : > { %v1192_v13 = vsel %vm1173_vm6, %v1189_v42, %v1191_v34  ;;  %1561 = vst.msk [vmem:[#allocation2 + $0xb8] sm:$0xf] %vm315_vm3, %v1537_v29  ;;  %v1535_v29 = vld [vmem:[%s3480_s19 + $0xb4] sm:$0xf] }
 0x164   : > { %v1033_v15 = vpop.f32.mrf.mxu2  ;;  %1239 = vrot.lane.b32.xlu2 %v1192_v13, %s3438_s30  ;;  %v4414_v37 = vpop.f32.mrf.mxu1  ;;  %1705 = vst.msk [vmem:[#allocation2 + $0xb8] sm:$0xf] %vm460_vm5, %v1699_v46 }
 0x165   : > { %v1107_v21 = vadd.f32 %v4134_v56, %v1033_v15  ;;  %1559 = vst.msk [vmem:[#allocation2 + $0xa8] sm:$0xf] %vm315_vm3, %v1535_v29 }
 0x166   : > { %3263 = vmatmul.msk.bf16.gmra.mxu3 %vm816_vm4, %v4406_v30  ;;  %v890_v61 = vpop.f32.mrf.mxu0 }
 0x167   : > { %v1362_v42 = vrot.slane %v1107_v21, 2  ;;  %v4422_v20 = vadd.f32 %v4142_v62, %v890_v61  ;;  %2119 = vmatmul.bf16.gmra.mxu1 %v4410_v17  ;;  %v3351_v21 = vld [vmem:[#allocation2 + $0x84] sm:$0xf]  ;;  %v1695_v46 = vpop.permute.xlu0 %1694 }
 0x168   : > { %1703 = vst.msk [vmem:[#allocation2 + $0xa8] sm:$0xf] %vm460_vm5, %v1695_v46 }
 0x169   : > { %5012 = vst [vmem:[#allocation17_spill] sm:$0xff] %v4422_v20  ;;  %v1193_v11 = vrot.slane %v4422_v20, 1  ;;  %v4428_v56 = vpop.f32.mrf.mxu3  ;;  %2230 = vmatmul.bf16.vlgmr.msrb.gmra.mxu0 %v4140_v59  ;;  %3269 = vmatmul.msk.bf16.vlgmr.msrb.gmra.mxu2 %vm816_vm4, %v4137_v58  ;;  %v4435_v62 = vsel %vm1344_vm7, %v1360_v19, %v1362_v42  ;;  %v3132_v58 = vld [vmem:[#allocation2 + $0x88] sm:$0xf0]  ;;  %v3130_v20 = vld [vmem:[#allocation2 + $0x80] sm:$0xf] }
 0x16a   : > { %v3352_v19 = vld [vmem:[#allocation2 + $0x84] sm:$0xf0] }
 0x16b   : > { %v1194_v15 = vsel %vm1173_vm6, %v1191_v34, %v1193_v11 }
 0x16c   : > { %v1036_v31 = vpop.f32.mrf.mxu2  ;;  %1241 = vrot.lane.b32.xlu0 %v1194_v15, %s3438_s30  ;;  %v1000_v43 = vpop.f32.mrf.mxu1 }
 0x16d   : > { %v1110_v9 = vadd.f32 %v4147_v2, %v1036_v31  ;;  %v4450_v31 = vor.u32 %v3351_v21, %v3132_v58  ;;  %v4453_v43 = vor.u32 %v3352_v19, %v3130_v20  ;;  %v1536_v21 = vld [vmem:[%s3480_s19 + $0xb8] sm:$0xf] }
 0x16e   : > { %v892_v13 = vpop.f32.mrf.mxu0  ;;  %1560 = vst.msk [vmem:[#allocation2 + $0xb0] sm:$0xf] %vm315_vm3, %v1536_v21  ;;  %v3353_v21 = vld [vmem:[#allocation2 + $0x94] sm:$0xf] }
 0x16f   : > { %v1364_v61 = vrot.slane %v1110_v9, 2  ;;  %v4441_v59 = vadd.f32 %v4151_v6, %v892_v13  ;;  %5013 = vst [vmem:[#allocation18_spill] sm:$0xff] %v4450_v31 }
 0x170   : > { %5014 = vst [vmem:[#allocation19_spill] sm:$0xff] %v4453_v43 }
 0x171   : > { %v1195_v34 = vrot.slane %v4441_v59, 1  ;;  %v1146_v15 = vpop.f32.mrf.mxu3  ;;  %v4448_v2 = vsel %vm1344_vm7, %v1362_v42, %v1364_v61 }
 0x173   : > { %v1196_v6 = vsel %vm1173_vm6, %v1193_v11, %v1195_v34  ;;  %v1697_v11 = vpop.permute.xlu1 %1696 }
 0x174   : > { %v1038_v9 = vpop.f32.mrf.mxu2  ;;  %1243 = vrot.lane.b32.xlu1 %v1196_v6, %s3438_s30  ;;  %v2085_v13 = vpop.f32.mrf.mxu1  ;;  %1704 = vst.msk [vmem:[#allocation2 + $0xb0] sm:$0xf] %vm460_vm5, %v1697_v11  ;;  %v3354_v11 = vld [vmem:[#allocation2 + $0x94] sm:$0xf0] }
 0x175   : > { %v1112_v29 = vadd.f32 %v4156_v18, %v1038_v9 }
 0x176   : > { %3264 = vmatmul.msk.bf16.gmra.mxu3 %vm816_vm4, %v4450_v31  ;;  %v895_v15 = vpop.f32.mrf.mxu0 }
 0x177   : > { %v1366_v46 = vrot.slane %v1112_v29, 2  ;;  %v4460_v42 = vadd.f32 %v4175_v33, %v895_v15  ;;  %2124 = vmatmul.bf16.gmra.mxu1 %v4453_v43 }
 0x179   : > { %5015 = vst [vmem:[#allocation20_spill] sm:$0xff] %v4460_v42  ;;  %v1197_v20 = vrot.slane %v4460_v42, 1  ;;  %v2158_v58 = vpop.f32.mrf.mxu3  ;;  %2235 = vmatmul.bf16.gmra.mxu0 %v4170_v32  ;;  %3270 = vmatmul.msk.bf16.gmra.mxu2 %vm816_vm4, %v4165_v24  ;;  %v4471_v18 = vsel %vm1344_vm7, %v1364_v61, %v1366_v46  ;;  %v3140_v24 = vld [vmem:[#allocation2 + $0x98] sm:$0xf0]  ;;  %v3138_v42 = vld [vmem:[#allocation2 + $0x90] sm:$0xf] }
 0x17a   : > { %v4483_v43 = vor.u32 %v3353_v21, %v3140_v24 }
 0x17b   : > { %v1198_v33 = vsel %vm1173_vm6, %v1195_v34, %v1197_v20 }
 0x17c   : > { %v1041_v19 = vpop.f32.mrf.mxu2  ;;  %1245 = vrot.lane.b32.xlu2 %v1198_v33, %s3438_s30  ;;  %v2087_v6 = vpop.f32.mrf.mxu1  ;;  %v4485_v33 = vadd.f32 %v2158_v58, %v2085_v13 }
 0x17d   : > { %v1115_v9 = vadd.f32 %v4180_v39, %v1041_v19 }
 0x17e   : > { %v897_v29 = vpop.f32.mrf.mxu0  ;;  %5017 = vst [vmem:[#allocation22_spill] sm:$0xff] %v4485_v33  ;;  %v2393_v21 = vrot.slane %v4485_v33, 1 }
 0x17f   : > { %v1368_v15 = vrot.slane %v1115_v9, 2  ;;  %v4477_v32 = vadd.f32 %v4184_v41, %v897_v29  ;;  %v4490_v41 = vor.u32 %v3354_v11, %v3138_v42 }
 0x181   : > { %5016 = vst [vmem:[#allocation21_spill] sm:$0xff] %v4477_v32  ;;  %v1199_v61 = vrot.slane %v4477_v32, 1  ;;  %v2160_v31 = vpop.f32.mrf.mxu3  ;;  %v4481_v34 = vsel %vm1344_vm7, %v1366_v46, %v1368_v15 }
 0x182   : > { %v4487_v39 = vadd.f32 %v2160_v31, %v2087_v6 }
 0x183   : > { %v1200_v19 = vsel %vm1173_vm6, %v1197_v20, %v1199_v61 }
 0x184   : > { %5018 = vst [vmem:[#allocation23_spill] sm:$0xff] %v4487_v39  ;;  %v1043_v9 = vpop.f32.mrf.mxu2  ;;  %1247 = vrot.lane.b32.xlu0 %v1200_v19, %s3438_s30  ;;  %v2090_v29 = vpop.f32.mrf.mxu1  ;;  %v2394_v13 = vrot.slane %v4487_v39, 1  ;;  %v3356_v39 = vld [vmem:[#allocation2 + $0xa4] sm:$0xf0] }
 0x185   : > { %v1117_v32 = vadd.f32 %v4189_v54, %v1043_v9 }
 0x186   : > { %3265 = vmatmul.msk.bf16.gmra.mxu3 %vm816_vm4, %v4483_v43  ;;  %v900_v46 = vpop.f32.mrf.mxu0 }
 0x187   : > { %v1370_v31 = vrot.slane %v1117_v32, 2  ;;  %v4499_v58 = vadd.f32 %v4198_v63, %v900_v46  ;;  %2129 = vmatmul.bf16.gmra.mxu1 %v4490_v41  ;;  %v2395_v32 = vsel %vm1173_vm6, %v2393_v21, %v2394_v13  ;;  %v3148_v46 = vld [vmem:[#allocation2 + $0xa8] sm:$0xf0] }
 0x189   : > { %v1201_v42 = vrot.slane %v4499_v58, 1  ;;  %v2163_v20 = vpop.f32.mrf.mxu3  ;;  %2240 = vmatmul.bf16.gmra.mxu0 %v4195_v57  ;;  %3271 = vmatmul.msk.bf16.gmra.mxu2 %vm816_vm4, %v4192_v55  ;;  %v4507_v54 = vsel %vm1344_vm7, %v1368_v15, %v1370_v31  ;;  %v3355_v55 = vld [vmem:[#allocation2 + $0xa4] sm:$0xf] }
 0x18a   : > { %v4509_v6 = vadd.f32 %v2163_v20, %v2090_v29 }
 0x18b   : > { %v1202_v63 = vsel %vm1173_vm6, %v1199_v61, %v1201_v42  ;;  %v3146_v61 = vld [vmem:[#allocation2 + $0xa0] sm:$0xf] }
 0x18c   : > { %5019 = vst [vmem:[#allocation24_spill] sm:$0xff] %v4509_v6  ;;  %v1046_v24 = vpop.f32.mrf.mxu2  ;;  %2442 = vrot.lane.b32.xlu0 %v2395_v32, %s3438_s30  ;;  %1249 = vrot.lane.b32.xlu1 %v1202_v63, %s3438_s30  ;;  %v2092_v11 = vpop.f32.mrf.mxu1  ;;  %v2396_v15 = vrot.slane %v4509_v6, 1  ;;  %v4528_v6 = vor.u32 %v3356_v39, %v3146_v61 }
 0x18d   : > { %v1120_v57 = vadd.f32 %v4209_v14, %v1046_v24  ;;  %v4526_v24 = vor.u32 %v3355_v55, %v3148_v46 }
 0x18e   : > { %v1228_v19 = vpop.permute.xlu2 %1227  ;;  %v902_v9 = vpop.f32.mrf.mxu0 }
 0x18f   : > { %v1372_v29 = vrot.slane %v1120_v57, 2  ;;  %v1297_v20 = vadd.f32 %v1228_v19, %v4248_v16  ;;  %v4519_v21 = vadd.f32 %v4217_v22, %v902_v9  ;;  %v2397_v22 = vsel %vm1173_vm6, %v2394_v13, %v2396_v15 }
 0x191   : > { %v1420_v32 = vadd.f32 %v4302_v44, %v1297_v20  ;;  %v1203_v63 = vrot.slane %v4519_v21, 1  ;;  %v2165_v33 = vpop.f32.mrf.mxu3  ;;  %v4524_v14 = vsel %vm1344_vm7, %v1370_v31, %v1372_v29 }
 0x192   : > { %v4530_v16 = vadd.f32 %v2165_v33, %v2092_v11 }
 0x193   : > { %v1444_v57 = vmax.f32 %v1420_v32, 0.0  ;;  %v1204_v19 = vsel %vm1173_vm6, %v1201_v42, %v1203_v63 }
 0x194   : > { %v1048_v9 = vpop.f32.mrf.mxu2  ;;  %2444 = vrot.lane.b32.xlu1 %v2397_v22, %s3438_s30  ;;  %1251 = vrot.lane.b32.xlu2 %v1204_v19, %s3438_s30  ;;  %v2095_v44 = vpop.f32.mrf.mxu1  ;;  %v2398_v33 = vrot.slane %v4530_v16, 1 }
 0x195   : > { %v1468_v31 = vpack.c.bf16 %v1444_v57, %v1444_v57  ;;  %v1122_v20 = vadd.f32 %v4230_v49, %v1048_v9 }
 0x196   : > { %3266 = vmatmul.msk.bf16.gmra.mxu3 %vm816_vm4, %v4526_v24  ;;  %v1224_v39 = vpop.permute.xlu0 %1223  ;;  %v905_v55 = vpop.f32.mrf.mxu0 }
 0x197   : > { %1492 = vst.msk [vmem:[%s3490_s27 + $0x8] sm:$0xf] %vm315_vm3, %v1468_v31  ;;  %v1374_v13 = vrot.slane %v1122_v20, 2  ;;  %v1295_v42 = vadd.f32 %v1224_v39, %v4220_v26  ;;  %v4544_v11 = vadd.f32 %v4242_v5, %v905_v55  ;;  %2134 = vmatmul.bf16.gmra.mxu1 %v4528_v6  ;;  %v2399_v5 = vsel %vm1173_vm6, %v2396_v15, %v2398_v33  ;;  %v3357_v31 = vld [vmem:[#allocation2 + $0xb4] sm:$0xf] }
 0x198   : > { %v3156_v20 = vld [vmem:[#allocation2 + $0xb8] sm:$0xf0]  ;;  %v3154_v39 = vld [vmem:[#allocation2 + $0xb0] sm:$0xf] }
 0x199   : > { %v1418_v46 = vadd.f32 %v4255_v7, %v1295_v42  ;;  %v1205_v49 = vrot.slane %v4544_v11, 1  ;;  %v2168_v61 = vpop.f32.mrf.mxu3  ;;  %2245 = vmatmul.bf16.gmra.mxu0 %v4238_v0  ;;  %3272 = vmatmul.msk.bf16.gmra.mxu2 %vm816_vm4, %v4233_v52  ;;  %v4553_v32 = vsel %vm1344_vm7, %v1372_v29, %v1374_v13  ;;  %v3358_v42 = vld [vmem:[#allocation2 + $0xb4] sm:$0xf0] }
 0x19a   : > { %v4555_v57 = vadd.f32 %v2168_v61, %v2095_v44 }
 0x19b   : > { %v1442_v26 = vmax.f32 %v1418_v46, 0.0  ;;  %v1206_v22 = vsel %vm1173_vm6, %v1203_v63, %v1205_v49 }
 0x19c   : > { %v1051_v7 = vpop.f32.mrf.mxu2  ;;  %2446 = vrot.lane.b32.xlu2 %v2399_v5, %s3438_s30  ;;  %1253 = vrot.lane.b32.xlu0 %v1206_v22, %s3438_s30  ;;  %v2097_v0 = vpop.f32.mrf.mxu1  ;;  %v2400_v15 = vrot.slane %v4555_v57, 1  ;;  %v4574_v5 = vor.u32 %v3357_v31, %v3156_v20  ;;  %v4576_v22 = vor.u32 %v3358_v42, %v3154_v39 }
 0x19d   : > { %v1466_v19 = vpack.c.bf16 %v1442_v26, %v1442_v26  ;;  %v1125_v52 = vadd.f32 %v4252_v27, %v1051_v7 }
 0x19e   : > { %v1226_v9 = vpop.permute.xlu1 %1225  ;;  %v907_v29 = vpop.f32.mrf.mxu0 }
 0x19f   : > { %1490 = vst.msk [vmem:[%s3490_s27] sm:$0xf] %vm315_vm3, %v1466_v19  ;;  %v1376_v44 = vrot.slane %v1125_v52, 2  ;;  %v1296_v63 = vadd.f32 %v1226_v9, %v4223_v35  ;;  %v4567_v55 = vadd.f32 %v4259_v12, %v907_v29  ;;  %v2401_v35 = vsel %vm1173_vm6, %v2398_v33, %v2400_v15 }
 0x1a1   : > { %v1419_v46 = vadd.f32 %v4273_v23, %v1296_v63  ;;  %v1207_v27 = vrot.slane %v4567_v55, 1  ;;  %v2170_v61 = vpop.f32.mrf.mxu3  ;;  %v4572_v26 = vsel %vm1344_vm7, %v1374_v13, %v1376_v44 }
 0x1a2   : > { %v4578_v19 = vadd.f32 %v2170_v61, %v2097_v0 }
 0x1a3   : > { %v1443_v7 = vmax.f32 %v1419_v46, 0.0  ;;  %v1208_v12 = vsel %vm1173_vm6, %v1205_v49, %v1207_v27 }
 0x1a4   : > { %v1053_v52 = vpop.f32.mrf.mxu2  ;;  %2448 = vrot.lane.b32.xlu0 %v2401_v35, %s3438_s30  ;;  %1255 = vrot.lane.b32.xlu1 %v1208_v12, %s3438_s30  ;;  %v2100_v23 = vpop.f32.mrf.mxu1  ;;  %v2402_v33 = vrot.slane %v4578_v19, 1 }
 0x1a5   : > { %v1467_v13 = vpack.c.bf16 %v1443_v7, %v1443_v7  ;;  %v1127_v9 = vadd.f32 %v4269_v4, %v1053_v52 }
 0x1a6   : > { %3267 = vmatmul.msk.bf16.gmra.mxu3 %vm816_vm4, %v4574_v5  ;;  %v1234_v29 = vpop.permute.xlu2 %1233  ;;  %v910_v31 = vpop.f32.mrf.mxu0 }
 0x1a7   : > { %1491 = vst.msk [vmem:[%s3490_s27 + $0x4] sm:$0xf] %vm315_vm3, %v1467_v13  ;;  %v1378_v0 = vrot.slane %v1127_v9, 2  ;;  %v1300_v49 = vadd.f32 %v1234_v29, %v4310_v48  ;;  %v4592_v20 = vadd.f32 %v4283_v28, %v910_v31  ;;  %2139 = vmatmul.bf16.gmra.mxu1 %v4576_v22  ;;  %v2403_v28 = vsel %vm1173_vm6, %v2400_v15, %v2402_v33  ;;  %v5020_v9 = vld [vmem:[#allocation4_spill] sm:$0xff] }
 0x1a9   : > { %v1423_v39 = vadd.f32 %v4362_v60, %v1300_v49  ;;  %v1209_v4 = vrot.slane %v4592_v20, 1  ;;  %v2173_v63 = vpop.f32.mrf.mxu3  ;;  %2250 = vmatmul.bf16.gmra.mxu0 %v4279_v50  ;;  %3273 = vmatmul.msk.bf16.gmra.mxu2 %vm816_vm4, %v4275_v8  ;;  %v4601_v42 = vsel %vm1344_vm7, %v1376_v44, %v1378_v0  ;;  %v1778_v60 = vld [vmem:[#allocation2 + $0xc0] sm:$0xff] }
 0x1aa   : > { %v4603_v46 = vadd.f32 %v2173_v63, %v2100_v23  ;;  %v1877_v52 = vunpack.c.h.b16 %v1778_v60  ;;  %v1876_v13 = vunpack.c.l.b16 %v1778_v60 }
 0x1ab   : > { %v1447_v48 = vmax.f32 %v1423_v39, 0.0  ;;  %v1210_v61 = vsel %vm1173_vm6, %v1207_v27, %v1209_v4 }
 0x1ac   : > { %v1056_v7 = vpop.f32.mrf.mxu2  ;;  %2450 = vrot.lane.b32.xlu1 %v2403_v28, %s3438_s30  ;;  %1257 = vrot.lane.b32.xlu2 %v1210_v61, %s3438_s30  ;;  %v2102_v50 = vpop.f32.mrf.mxu1  ;;  %v2404_v15 = vrot.slane %v4603_v46, 1  ;;  %v4622_v63 = vpack.c.b16 %v1877_v52, %v1877_v52 }
 0x1ad   : > { %v1471_v35 = vpack.c.bf16 %v1447_v48, %v1447_v48  ;;  %v1130_v8 = vadd.f32 %v4299_v1, %v1056_v7  ;;  %v4624_v48 = vpack.c.b16 %v1876_v13, %v1876_v13 }
 0x1ae   : > { %v1230_v44 = vpop.permute.xlu0 %1229  ;;  %v912_v12 = vpop.f32.mrf.mxu0 }
 0x1af   : > { %1495 = vst.msk [vmem:[%s3490_s27 + $0x14] sm:$0xf] %vm315_vm3, %v1471_v35  ;;  %v1380_v23 = vrot.slane %v1130_v8, 2  ;;  %v1298_v27 = vadd.f32 %v1230_v44, %v4263_v47  ;;  %v4615_v29 = vadd.f32 %v5020_v9, %v912_v12  ;;  %v2405_v47 = vsel %vm1173_vm6, %v2402_v33, %v2404_v15  ;;  %v5021_v35 = vld [vmem:[#allocation5_spill] sm:$0xff] }
 0x1b1   : > { %v1421_v31 = vadd.f32 %v4320_v51, %v1298_v27  ;;  %v1211_v49 = vrot.slane %v4615_v29, 1  ;;  %v2175_v39 = vpop.f32.mrf.mxu3  ;;  %v4620_v1 = vsel %vm1344_vm7, %v1378_v0, %v1380_v23 }
 0x1b2   : > { %v4626_v61 = vadd.f32 %v2175_v39, %v2102_v50  ;;  %v5023_v39 = vld [vmem:[#allocation7_spill] sm:$0xff] }
 0x1b3   : > { %v1445_v28 = vmax.f32 %v1421_v31, 0.0  ;;  %v1212_v60 = vsel %vm1173_vm6, %v1209_v4, %v1211_v49  ;;  %v5022_v4 = vld [vmem:[#allocation3_spill] sm:$0xff] }
 0x1b4   : > { %v1058_v7 = vpop.f32.mrf.mxu2  ;;  %2452 = vrot.lane.b32.xlu2 %v2405_v47, %s3438_s30  ;;  %1259 = vrot.lane.b32.xlu0 %v1212_v60, %s3438_s30  ;;  %v2105_v51 = vpop.f32.mrf.mxu1  ;;  %v2406_v33 = vrot.slane %v4626_v61, 1 }
 0x1b5   : > { %v1469_v0 = vpack.c.bf16 %v1445_v28, %v1445_v28  ;;  %v1132_v8 = vadd.f32 %v5021_v35, %v1058_v7  ;;  %v5024_v28 = vld [vmem:[#allocation6_spill] sm:$0xff] }
 0x1b6   : > { %3268 = vmatmul.msk.bf16.gmra.mxu3 %vm816_vm4, %v4622_v63  ;;  %v1232_v44 = vpop.permute.xlu1 %1231  ;;  %v915_v12 = vpop.f32.mrf.mxu0 }
 0x1b7   : > { %1493 = vst.msk [vmem:[%s3490_s27 + $0xc] sm:$0xf] %vm315_vm3, %v1469_v0  ;;  %v1382_v50 = vrot.slane %v1132_v8, 2  ;;  %v1299_v52 = vadd.f32 %v1232_v44, %v5022_v4  ;;  %v4640_v13 = vadd.f32 %v4330_v45, %v915_v12  ;;  %2144 = vmatmul.bf16.gmra.mxu1 %v4624_v48  ;;  %v2407_v45 = vsel %vm1173_vm6, %v2404_v15, %v2406_v33  ;;  %v5025_v44 = vld [vmem:[#allocation9_spill] sm:$0xff] }
 0x1b9   : > { %v1422_v27 = vadd.f32 %v4343_v3, %v1299_v52  ;;  %v1213_v9 = vrot.slane %v4640_v13, 1  ;;  %v2178_v31 = vpop.f32.mrf.mxu3  ;;  %2255 = vmatmul.bf16.gmra.mxu0 %v5023_v39  ;;  %3274 = vmatmul.msk.bf16.gmra.mxu2 %vm816_vm4, %v5024_v28  ;;  %v4649_v47 = vsel %vm1344_vm7, %v1380_v23, %v1382_v50 }
 0x1ba   : > { %v4651_v7 = vadd.f32 %v2178_v31, %v2105_v51 }
 0x1bb   : > { %v1446_v60 = vmax.f32 %v1422_v27, 0.0  ;;  %v1214_v0 = vsel %vm1173_vm6, %v1211_v49, %v1213_v9  ;;  %v5026_v27 = vld [vmem:[#allocation10_spill] sm:$0xff] }
 0x1bc   : > { %v1061_v3 = vpop.f32.mrf.mxu2  ;;  %2454 = vrot.lane.b32.xlu0 %v2407_v45, %s3438_s30  ;;  %1261 = vrot.lane.b32.xlu1 %v1214_v0, %s3438_s30  ;;  %v2107_v35 = vpop.f32.mrf.mxu1  ;;  %v2408_v23 = vrot.slane %v4651_v7, 1 }
 0x1bd   : > { %v1470_v8 = vpack.c.bf16 %v1446_v60, %v1446_v60  ;;  %v1135_v12 = vadd.f32 %v5025_v44, %v1061_v3 }
 0x1be   : > { %v1240_v4 = vpop.permute.xlu2 %1239  ;;  %v917_v52 = vpop.f32.mrf.mxu0  ;;  %v2409_v3 = vsel %vm1173_vm6, %v2406_v33, %v2408_v23 }
 0x1bf   : > { %1494 = vst.msk [vmem:[%s3490_s27 + $0x10] sm:$0xf] %vm315_vm3, %v1470_v8  ;;  %v1384_v51 = vrot.slane %v1135_v12, 2  ;;  %v1303_v15 = vadd.f32 %v1240_v4, %v4378_v38  ;;  %v4663_v49 = vadd.f32 %v5026_v27, %v917_v52 }
 0x1c1   : > { %v1426_v31 = vadd.f32 %v4435_v62, %v1303_v15  ;;  %v1215_v39 = vrot.slane %v4663_v49, 1  ;;  %v2180_v28 = vpop.f32.mrf.mxu3  ;;  %v4668_v60 = vsel %vm1344_vm7, %v1382_v50, %v1384_v51  ;;  %v5027_v15 = vld [vmem:[#allocation8_spill] sm:$0xff] }
 0x1c2   : > { %v4670_v0 = vadd.f32 %v2180_v28, %v2107_v35 }
 0x1c3   : > { %v1450_v45 = vmax.f32 %v1426_v31, 0.0  ;;  %v1216_v8 = vsel %vm1173_vm6, %v1213_v9, %v1215_v39 }
 0x1c4   : > { %v1063_v38 = vpop.f32.mrf.mxu2  ;;  %2456 = vrot.lane.b32.xlu1 %v2409_v3, %s3438_s30  ;;  %1263 = vrot.lane.b32.xlu2 %v1216_v8, %s3438_s30  ;;  %v2110_v62 = vpop.f32.mrf.mxu1  ;;  %v2410_v50 = vrot.slane %v4670_v0, 1 }
 0x1c5   : > { %v1474_v44 = vpack.c.bf16 %v1450_v45, %v1450_v45  ;;  %v1137_v12 = vadd.f32 %v4357_v10, %v1063_v38  ;;  %v5028_v45 = vld [vmem:[#allocation13_spill] sm:$0xff]  ;;  %v5029_v10 = vld [vmem:[#allocation12_spill] sm:$0xff] }
 0x1c6   : > { %v1236_v4 = vpop.permute.xlu0 %1235  ;;  %v920_v52 = vpop.f32.mrf.mxu0 }
 0x1c7   : > { %1498 = vst.msk [vmem:[%s3490_s27 + $0x20] sm:$0xf] %vm315_vm3, %v1474_v44  ;;  %v1386_v35 = vrot.slane %v1137_v12, 2  ;;  %v1301_v33 = vadd.f32 %v1236_v4, %v5027_v15  ;;  %v4682_v9 = vadd.f32 %v4372_v53, %v920_v52  ;;  %v2411_v53 = vsel %vm1173_vm6, %v2408_v23, %v2410_v50  ;;  %v5030_v52 = vld [vmem:[#allocation14_spill] sm:$0xff] }
 0x1c9   : > { %v1424_v27 = vadd.f32 %v4385_v25, %v1301_v33  ;;  %v1217_v31 = vrot.slane %v4682_v9, 1  ;;  %v2183_v28 = vpop.f32.mrf.mxu3  ;;  %2260 = vmatmul.bf16.gmra.mxu0 %v5028_v45  ;;  %3275 = vmatmul.msk.bf16.gmra.mxu2 %vm816_vm4, %v5029_v10  ;;  %v4690_v3 = vsel %vm1344_vm7, %v1384_v51, %v1386_v35 }
 0x1ca   : > { %v4692_v38 = vadd.f32 %v2183_v28, %v2110_v62  ;;  %v5032_v28 = vld [vmem:[#allocation15_spill] sm:$0xff] }
 0x1cb   : > { %v1448_v8 = vmax.f32 %v1424_v27, 0.0  ;;  %v1218_v44 = vsel %vm1173_vm6, %v1215_v39, %v1217_v31  ;;  %v5031_v27 = vld [vmem:[#allocation11_spill] sm:$0xff] }
 0x1cc   : > { %v1066_v25 = vpop.f32.mrf.mxu2  ;;  %2458 = vrot.lane.b32.xlu2 %v2411_v53, %s3438_s30  ;;  %1265 = vrot.lane.b32.xlu0 %v1218_v44, %s3438_s30  ;;  %v2112_v12 = vpop.f32.mrf.mxu1  ;;  %v2412_v51 = vrot.slane %v4692_v38, 1 }
 0x1cd   : > { %v1472_v4 = vpack.c.bf16 %v1448_v8, %v1448_v8  ;;  %v1140_v15 = vadd.f32 %v5030_v52, %v1066_v25 }
 0x1ce   : > { %v1238_v33 = vpop.permute.xlu1 %1237  ;;  %v922_v45 = vpop.f32.mrf.mxu0 }
 0x1cf   : > { %1496 = vst.msk [vmem:[%s3490_s27 + $0x18] sm:$0xf] %vm315_vm3, %v1472_v4  ;;  %v1388_v62 = vrot.slane %v1140_v15, 2  ;;  %v1302_v23 = vadd.f32 %v1238_v33, %v5031_v27  ;;  %v4704_v39 = vadd.f32 %v5032_v28, %v922_v45  ;;  %v2413_v4 = vsel %vm1173_vm6, %v2410_v50, %v2412_v51 }
 0x1d1   : > { %v1425_v10 = vadd.f32 %v4404_v40, %v1302_v23  ;;  %v1219_v53 = vrot.slane %v4704_v39, 1  ;;  %v2185_v8 = vpop.f32.mrf.mxu3  ;;  %v4709_v44 = vsel %vm1344_vm7, %v1386_v35, %v1388_v62 }
 0x1d2   : > { %v4711_v52 = vadd.f32 %v2185_v8, %v2112_v12 }
 0x1d3   : > { %v1449_v25 = vmax.f32 %v1425_v10, 0.0  ;;  %v1220_v15 = vsel %vm1173_vm6, %v1217_v31, %v1219_v53 }
 0x1d4   : > { %v1068_v33 = vpop.f32.mrf.mxu2  ;;  %2460 = vrot.lane.b32.xlu0 %v2413_v4, %s3438_s30  ;;  %1267 = vrot.lane.b32.xlu1 %v1220_v15, %s3438_s30  ;;  %v2115_v40 = vpop.f32.mrf.mxu1  ;;  %v2414_v35 = vrot.slane %v4711_v52, 1 }
 0x1d5   : > { %v1473_v45 = vpack.c.bf16 %v1449_v25, %v1449_v25  ;;  %v1142_v27 = vadd.f32 %v4399_v36, %v1068_v33 }
 0x1d6   : > { %v1246_v23 = vpop.permute.xlu2 %1245  ;;  %v925_v28 = vpop.f32.mrf.mxu0 }
 0x1d7   : > { %1497 = vst.msk [vmem:[%s3490_s27 + $0x1c] sm:$0xf] %vm315_vm3, %v1473_v45  ;;  %v1390_v12 = vrot.slane %v1142_v27, 2  ;;  %v1306_v50 = vadd.f32 %v1246_v23, %v4441_v59  ;;  %v999_v31 = vadd.f32 %v4414_v37, %v925_v28  ;;  %v2415_v59 = vsel %vm1173_vm6, %v2412_v51, %v2414_v35  ;;  %v5033_v23 = vld [vmem:[#allocation16_spill] sm:$0xff] }
 0x1d9   : > { %v1429_v10 = vadd.f32 %v4481_v34, %v1306_v50  ;;  %v1221_v8 = vrot.slane %v999_v31, 1  ;;  %v2188_v4 = vpop.f32.mrf.mxu3  ;;  %2265 = vmatmul.bf16.gmra.mxu0 %v4410_v17  ;;  %3276 = vmatmul.msk.bf16.gmra.mxu2 %vm816_vm4, %v4406_v30  ;;  %v4728_v36 = vsel %vm1344_vm7, %v1388_v62, %v1390_v12 }
 0x1da   : > { %v4730_v15 = vadd.f32 %v2188_v4, %v2115_v40 }
 0x1db   : > { %v1453_v25 = vmax.f32 %v1429_v10, 0.0  ;;  %v1222_v37 = vsel %vm1173_vm6, %v1219_v53, %v1221_v8 }
 0x1dc   : > { %v1071_v33 = vpop.f32.mrf.mxu2  ;;  %2462 = vrot.lane.b32.xlu1 %v2415_v59, %s3438_s30  ;;  %1269 = vrot.lane.b32.xlu2 %v1222_v37, %s3438_s30  ;;  %v2117_v34 = vpop.f32.mrf.mxu1  ;;  %v2416_v62 = vrot.slane %v4730_v15, 1 }
 0x1dd   : > { %v1477_v17 = vpack.c.bf16 %v1453_v25, %v1453_v25  ;;  %v1145_v45 = vadd.f32 %v4428_v56, %v1071_v33 }
 0x1de   : > { %v1242_v30 = vpop.permute.xlu0 %1241  ;;  %v927_v27 = vpop.f32.mrf.mxu0  ;;  %v2417_v56 = vsel %vm1173_vm6, %v2414_v35, %v2416_v62 }
 0x1df   : > { %1501 = vst.msk [vmem:[%s3490_s27 + $0x2c] sm:$0xf] %vm315_vm3, %v1477_v17  ;;  %v1392_v40 = vrot.slane %v1145_v45, 2  ;;  %v1304_v51 = vadd.f32 %v1242_v30, %v5033_v23  ;;  %v5035_v45 = vld [vmem:[#allocation19_spill] sm:$0xff]  ;;  %v5036_v30 = vld [vmem:[#allocation18_spill] sm:$0xff] }
 0x1e1   : > { %v1427_v53 = vadd.f32 %v4448_v2, %v1304_v51  ;;  %v2190_v28 = vpop.f32.mrf.mxu3  ;;  %v4743_v50 = vsel %vm1344_vm7, %v1390_v12, %v1392_v40  ;;  %v5034_v12 = vld [vmem:[#allocation17_spill] sm:$0xff] }
 0x1e2   : > { %v4745_v31 = vadd.f32 %v2190_v28, %v2117_v34 }
 0x1e3   : > { %v1451_v10 = vmax.f32 %v1427_v53, 0.0 }
 0x1e4   : > { %v2418_v8 = vrot.slane %v4745_v31, 1  ;;  %v1073_v4 = vpop.f32.mrf.mxu2  ;;  %2464 = vrot.lane.b32.xlu2 %v2417_v56, %s3438_s30  ;;  %v2120_v25 = vpop.f32.mrf.mxu1 }
 0x1e5   : > { %v1475_v59 = vpack.c.bf16 %v1451_v10, %v1451_v10 }
 0x1e6   : > { %v1244_v37 = vpop.permute.xlu1 %1243  ;;  %v2419_v33 = vsel %vm1173_vm6, %v2416_v62, %v2418_v8  ;;  %v2231_v2 = vpop.f32.mrf.mxu0 }
 0x1e7   : > { %1499 = vst.msk [vmem:[%s3490_s27 + $0x24] sm:$0xf] %vm315_vm3, %v1475_v59  ;;  %v1305_v34 = vadd.f32 %v1244_v37, %v5034_v12  ;;  %2466 = vrot.lane.b32.xlu0 %v2419_v33, %s3438_s30 }
 0x1e9   : > { %v1428_v35 = vadd.f32 %v4471_v18, %v1305_v34  ;;  %v2193_v17 = vpop.f32.mrf.mxu3  ;;  %2270 = vmatmul.bf16.gmra.mxu0 %v5035_v45  ;;  %3277 = vmatmul.msk.bf16.gmra.mxu2 %vm816_vm4, %v5036_v30  ;;  %v5037_v45 = vld [vmem:[#allocation20_spill] sm:$0xff] }
 0x1ea   : > { %v4759_v27 = vadd.f32 %v2193_v17, %v2120_v25 }
 0x1eb   : > { %v1452_v40 = vmax.f32 %v1428_v35, 0.0 }
 0x1ec   : > { %v2420_v62 = vrot.slane %v4759_v27, 1  ;;  %v2304_v23 = vpop.f32.mrf.mxu2  ;;  %v2122_v51 = vpop.f32.mrf.mxu1 }
 0x1ed   : > { %v1476_v53 = vpack.c.bf16 %v1452_v40, %v1452_v40 }
 0x1ee   : > { %v1252_v28 = vpop.permute.xlu2 %1251  ;;  %v2421_v10 = vsel %vm1173_vm6, %v2418_v8, %v2420_v62  ;;  %v2233_v56 = vpop.f32.mrf.mxu0 }
 0x1ef   : > { %1500 = vst.msk [vmem:[%s3490_s27 + $0x28] sm:$0xf] %vm315_vm3, %v1476_v53  ;;  %v1309_v18 = vadd.f32 %v1252_v28, %v4499_v58  ;;  %2468 = vrot.lane.b32.xlu1 %v2421_v10, %s3438_s30  ;;  %v2305_v53 = vadd.f32 %v2304_v23, %v2231_v2  ;;  %v5039_v2 = vld [vmem:[#allocation21_spill] sm:$0xff] }
 0x1f1   : > { %v1432_v4 = vadd.f32 %v4553_v32, %v1309_v18  ;;  %v2195_v25 = vpop.f32.mrf.mxu3 }
 0x1f2   : > { %v4768_v59 = vadd.f32 %v2195_v25, %v2122_v51 }
 0x1f3   : > { %v1456_v37 = vmax.f32 %v1432_v4, 0.0 }
 0x1f4   : > { %v2422_v33 = vrot.slane %v4768_v59, 1  ;;  %v2306_v12 = vpop.f32.mrf.mxu2  ;;  %v2125_v34 = vpop.f32.mrf.mxu1 }
 0x1f5   : > { %v1480_v35 = vpack.c.bf16 %v1456_v37, %v1456_v37  ;;  %v2307_v32 = vadd.f32 %v2306_v12, %v2233_v56  ;;  %v2563_v12 = vrot.slane %v2305_v53, 2 }
 0x1f6   : > { %v1248_v17 = vpop.permute.xlu0 %1247  ;;  %v2423_v8 = vsel %vm1173_vm6, %v2420_v62, %v2422_v33  ;;  %v2236_v30 = vpop.f32.mrf.mxu0 }
 0x1f7   : > { %1504 = vst.msk [vmem:[%s3490_s27 + $0x38] sm:$0xf] %vm315_vm3, %v1480_v35  ;;  %v1307_v58 = vadd.f32 %v1248_v17, %v5037_v45  ;;  %2470 = vrot.lane.b32.xlu2 %v2423_v8, %s3438_s30  ;;  %v2564_v10 = vrot.slane %v2307_v32, 2  ;;  %v2447_v56 = vpop.permute.xlu2 %2446 }
 0x1f9   : > { %v1430_v40 = vadd.f32 %v4507_v54, %v1307_v58  ;;  %v2198_v51 = vpop.f32.mrf.mxu3  ;;  %2275 = vmatmul.bf16.gmra.mxu0 %v4490_v41  ;;  %3278 = vmatmul.msk.bf16.gmra.mxu2 %vm816_vm4, %v4483_v43  ;;  %v5038_v41 = vld [vmem:[#allocation22_spill] sm:$0xff]  ;;  %v2565_v45 = vsel %vm1344_vm7, %v2563_v12, %v2564_v10 }
 0x1fa   : > { %v4780_v28 = vadd.f32 %v2198_v51, %v2125_v34 }
 0x1fb   : > { %v1454_v62 = vmax.f32 %v1430_v40, 0.0 }
 0x1fc   : > { %v2424_v18 = vrot.slane %v4780_v28, 1  ;;  %v2309_v4 = vpop.f32.mrf.mxu2  ;;  %v2127_v25 = vpop.f32.mrf.mxu1 }
 0x1fd   : > { %v1478_v37 = vpack.c.bf16 %v1454_v62, %v1454_v62  ;;  %v2310_v8 = vadd.f32 %v2309_v4, %v2236_v30 }
 0x1fe   : > { %v2443_v54 = vpop.permute.xlu0 %2442  ;;  %v1250_v35 = vpop.permute.xlu1 %1249  ;;  %v2425_v17 = vsel %vm1173_vm6, %v2422_v33, %v2424_v18 }
 0x1ff   : > { %1502 = vst.msk [vmem:[%s3490_s27 + $0x30] sm:$0xf] %vm315_vm3, %v1478_v37  ;;  %v2514_v43 = vadd.f32 %v2443_v54, %v5038_v41  ;;  %v1308_v23 = vadd.f32 %v1250_v35, %v5039_v2  ;;  %2472 = vrot.lane.b32.xlu0 %v2425_v17, %s3438_s30  ;;  %v2238_v34 = vpop.f32.mrf.mxu0  ;;  %v2566_v62 = vrot.slane %v2310_v8, 2 }
 0x201   : > { %v2636_v58 = vadd.f32 %v2565_v45, %v2514_v43  ;;  %v1431_v32 = vadd.f32 %v4524_v14, %v1308_v23  ;;  %v2200_v40 = vpop.f32.mrf.mxu3  ;;  %v5041_v45 = vld [vmem:[#allocation24_spill] sm:$0xff] }
 0x202   : > { %v4791_v51 = vadd.f32 %v2200_v40, %v2127_v25  ;;  %v5040_v25 = vld [vmem:[#allocation23_spill] sm:$0xff] }
 0x203   : > { %v2660_v33 = vmax.f32 %v2636_v58, 0.0  ;;  %v1455_v53 = vmax.f32 %v1431_v32, 0.0  ;;  %v2516_v58 = vadd.f32 %v2447_v56, %v5041_v45 }
 0x204   : > { %v2426_v37 = vrot.slane %v4791_v51, 1  ;;  %v2311_v54 = vpop.f32.mrf.mxu2  ;;  %v2130_v35 = vpop.f32.mrf.mxu1 }
 0x205   : > { %v2684_v17 = vpack.c.bf16 %v2660_v33, %v2660_v33  ;;  %v1479_v41 = vpack.c.bf16 %v1455_v53, %v1455_v53  ;;  %v2312_v30 = vadd.f32 %v2311_v54, %v2238_v34  ;;  %v2567_v34 = vsel %vm1344_vm7, %v2564_v10, %v2566_v62 }
 0x206   : > { %v2445_v4 = vpop.permute.xlu1 %2444  ;;  %v1258_v12 = vpop.permute.xlu2 %1257  ;;  %v2427_v43 = vsel %vm1173_vm6, %v2424_v18, %v2426_v37 }
 0x207   : > { %2708 = vst.msk [vmem:[%s3490_s27 + $0x60] sm:$0xf] %vm315_vm3, %v2684_v17  ;;  %v2568_v14 = vrot.slane %v2312_v30, 2  ;;  %v2515_v2 = vadd.f32 %v2445_v4, %v5040_v25  ;;  %v1312_v23 = vadd.f32 %v1258_v12, %v4567_v55  ;;  %2474 = vrot.lane.b32.xlu1 %v2427_v43, %s3438_s30  ;;  %v2241_v8 = vpop.f32.mrf.mxu0 }
 0x208   : > { %1503 = vst.msk [vmem:[%s3490_s27 + $0x34] sm:$0xf] %vm315_vm3, %v1479_v41 }
 0x209   : > { %v2569_v32 = vsel %vm1344_vm7, %v2566_v62, %v2568_v14  ;;  %v2637_v40 = vadd.f32 %v2567_v34, %v2515_v2  ;;  %v1435_v18 = vadd.f32 %v4620_v1, %v1312_v23  ;;  %v2203_v33 = vpop.f32.mrf.mxu3  ;;  %2280 = vmatmul.bf16.gmra.mxu0 %v4528_v6  ;;  %3279 = vmatmul.msk.bf16.gmra.mxu2 %vm816_vm4, %v4526_v24 }
 0x20a   : > { %v2638_v55 = vadd.f32 %v2569_v32, %v2516_v58  ;;  %v4809_v53 = vadd.f32 %v2203_v33, %v2130_v35 }
 0x20b   : > { %v2661_v56 = vmax.f32 %v2637_v40, 0.0  ;;  %v1459_v54 = vmax.f32 %v1435_v18, 0.0 }
 0x20c   : > { %v2662_v10 = vmax.f32 %v2638_v55, 0.0  ;;  %v2428_v62 = vrot.slane %v4809_v53, 1  ;;  %v2314_v17 = vpop.f32.mrf.mxu2  ;;  %v2132_v41 = vpop.f32.mrf.mxu1 }
 0x20d   : > { %v2685_v1 = vpack.c.bf16 %v2661_v56, %v2661_v56  ;;  %v1483_v30 = vpack.c.bf16 %v1459_v54, %v1459_v54  ;;  %v2315_v43 = vadd.f32 %v2314_v17, %v2241_v8 }
 0x20e   : > { %v2686_v4 = vpack.c.bf16 %v2662_v10, %v2662_v10  ;;  %v1254_v12 = vpop.permute.xlu0 %1253  ;;  %v2429_v6 = vsel %vm1173_vm6, %v2426_v37, %v2428_v62  ;;  %v2453_v40 = vpop.permute.xlu2 %2452 }
 0x20f   : > { %2709 = vst.msk [vmem:[%s3490_s27 + $0x64] sm:$0xf] %vm315_vm3, %v2685_v1  ;;  %v1310_v24 = vadd.f32 %v1254_v12, %v4519_v21  ;;  %2476 = vrot.lane.b32.xlu2 %v2429_v6, %s3438_s30  ;;  %v2243_v35 = vpop.f32.mrf.mxu0  ;;  %v2570_v37 = vrot.slane %v2315_v43, 2 }
 0x210   : > { %2710 = vst.msk [vmem:[%s3490_s27 + $0x68] sm:$0xf] %vm315_vm3, %v2686_v4 }
 0x211   : > { %1507 = vst.msk [vmem:[%s3490_s27 + $0x44] sm:$0xf] %vm315_vm3, %v1483_v30  ;;  %v1433_v25 = vadd.f32 %v4572_v26, %v1310_v24  ;;  %v2205_v2 = vpop.f32.mrf.mxu3  ;;  %v2571_v10 = vsel %vm1344_vm7, %v2568_v14, %v2570_v37 }
 0x212   : > { %v4822_v23 = vadd.f32 %v2205_v2, %v2132_v41 }
 0x213   : > { %v1457_v45 = vmax.f32 %v1433_v25, 0.0 }
 0x214   : > { %v2430_v58 = vrot.slane %v4822_v23, 1  ;;  %v2316_v34 = vpop.f32.mrf.mxu2  ;;  %v2135_v21 = vpop.f32.mrf.mxu1 }
 0x215   : > { %v1481_v32 = vpack.c.bf16 %v1457_v45, %v1457_v45  ;;  %v2317_v54 = vadd.f32 %v2316_v34, %v2243_v35  ;;  %v2519_v34 = vadd.f32 %v2453_v40, %v4578_v19 }
 0x216   : > { %v2449_v18 = vpop.permute.xlu0 %2448  ;;  %v1256_v33 = vpop.permute.xlu1 %1255  ;;  %v2431_v55 = vsel %vm1173_vm6, %v2428_v62, %v2430_v58 }
 0x217   : > { %1505 = vst.msk [vmem:[%s3490_s27 + $0x3c] sm:$0xf] %vm315_vm3, %v1481_v32  ;;  %v2517_v8 = vadd.f32 %v2449_v18, %v4530_v16  ;;  %v1311_v26 = vadd.f32 %v1256_v33, %v4544_v11  ;;  %2478 = vrot.lane.b32.xlu0 %v2431_v55, %s3438_s30  ;;  %v2246_v56 = vpop.f32.mrf.mxu0  ;;  %v2572_v30 = vrot.slane %v2317_v54, 2 }
 0x219   : > { %v2639_v17 = vadd.f32 %v2571_v10, %v2517_v8  ;;  %v1434_v41 = vadd.f32 %v4601_v42, %v1311_v26  ;;  %v2208_v1 = vpop.f32.mrf.mxu3  ;;  %2285 = vmatmul.bf16.gmra.mxu0 %v4576_v22  ;;  %3280 = vmatmul.msk.bf16.gmra.mxu2 %vm816_vm4, %v4574_v5 }
 0x21a   : > { %v4836_v62 = vadd.f32 %v2208_v1, %v2135_v21  ;;  %v2573_v21 = vsel %vm1344_vm7, %v2570_v37, %v2572_v30 }
 0x21b   : > { %v2663_v16 = vmax.f32 %v2639_v17, 0.0  ;;  %v1458_v11 = vmax.f32 %v1434_v41, 0.0 }
 0x21c   : > { %v2432_v4 = vrot.slane %v4836_v62, 1  ;;  %v2319_v12 = vpop.f32.mrf.mxu2  ;;  %v2137_v14 = vpop.f32.mrf.mxu1 }
 0x21d   : > { %v2687_v6 = vpack.c.bf16 %v2663_v16, %v2663_v16  ;;  %v1482_v24 = vpack.c.bf16 %v1458_v11, %v1458_v11  ;;  %v2320_v42 = vadd.f32 %v2319_v12, %v2246_v56 }
 0x21e   : > { %v2451_v35 = vpop.permute.xlu1 %2450  ;;  %v1264_v43 = vpop.permute.xlu2 %1263  ;;  %v2433_v22 = vsel %vm1173_vm6, %v2430_v58, %v2432_v4 }
 0x21f   : > { %2711 = vst.msk [vmem:[%s3490_s27 + $0x6c] sm:$0xf] %vm315_vm3, %v2687_v6  ;;  %v2574_v5 = vrot.slane %v2320_v42, 2  ;;  %v2518_v25 = vadd.f32 %v2451_v35, %v4555_v57  ;;  %v1315_v2 = vadd.f32 %v1264_v43, %v4640_v13  ;;  %2480 = vrot.lane.b32.xlu1 %v2433_v22, %s3438_s30  ;;  %v2248_v45 = vpop.f32.mrf.mxu0 }
 0x220   : > { %1506 = vst.msk [vmem:[%s3490_s27 + $0x40] sm:$0xf] %vm315_vm3, %v1482_v24 }
 0x221   : > { %v2575_v32 = vsel %vm1344_vm7, %v2572_v30, %v2574_v5  ;;  %v2640_v18 = vadd.f32 %v2573_v21, %v2518_v25  ;;  %v1438_v58 = vadd.f32 %v4690_v3, %v1315_v2  ;;  %v2210_v33 = vpop.f32.mrf.mxu3 }
 0x222   : > { %v2641_v55 = vadd.f32 %v2575_v32, %v2519_v34  ;;  %v4851_v57 = vadd.f32 %v2210_v33, %v2137_v14 }
 0x223   : > { %v2664_v13 = vmax.f32 %v2640_v18, 0.0  ;;  %v1462_v8 = vmax.f32 %v1438_v58, 0.0 }
 0x224   : > { %v2665_v26 = vmax.f32 %v2641_v55, 0.0  ;;  %v2434_v19 = vrot.slane %v4851_v57, 1  ;;  %v2321_v40 = vpop.f32.mrf.mxu2  ;;  %v2140_v56 = vpop.f32.mrf.mxu1 }
 0x225   : > { %v2688_v37 = vpack.c.bf16 %v2664_v13, %v2664_v13  ;;  %v1486_v54 = vpack.c.bf16 %v1462_v8, %v1462_v8  ;;  %v2322_v16 = vadd.f32 %v2321_v40, %v2248_v45 }
 0x226   : > { %v2689_v10 = vpack.c.bf16 %v2665_v26, %v2665_v26  ;;  %v1260_v17 = vpop.permute.xlu0 %1259  ;;  %v2435_v41 = vsel %vm1173_vm6, %v2432_v4, %v2434_v19  ;;  %v2459_v35 = vpop.permute.xlu2 %2458 }
 0x227   : > { %2712 = vst.msk [vmem:[%s3490_s27 + $0x70] sm:$0xf] %vm315_vm3, %v2688_v37  ;;  %v1313_v3 = vadd.f32 %v1260_v17, %v4592_v20  ;;  %2482 = vrot.lane.b32.xlu2 %v2435_v41, %s3438_s30  ;;  %v2251_v1 = vpop.f32.mrf.mxu0  ;;  %v2576_v12 = vrot.slane %v2322_v16, 2  ;;  %v2522_v17 = vadd.f32 %v2459_v35, %v4651_v7 }
 0x228   : > { %2713 = vst.msk [vmem:[%s3490_s27 + $0x74] sm:$0xf] %vm315_vm3, %v2689_v10 }
 0x229   : > { %1510 = vst.msk [vmem:[%s3490_s27 + $0x50] sm:$0xf] %vm315_vm3, %v1486_v54  ;;  %v1436_v11 = vadd.f32 %v4649_v47, %v1313_v3  ;;  %v2213_v30 = vpop.f32.mrf.mxu3  ;;  %2290 = vmatmul.bf16.gmra.mxu0 %v4624_v48  ;;  %3281 = vmatmul.msk.bf16.gmra.mxu2 %vm816_vm4, %v4622_v63  ;;  %v2577_v45 = vsel %vm1344_vm7, %v2574_v5, %v2576_v12 }
 0x22a   : > { %v4867_v4 = vadd.f32 %v2213_v30, %v2140_v56 }
 0x22b   : > { %v1460_v20 = vmax.f32 %v1436_v11, 0.0 }
 0x22c   : > { %v2436_v14 = vrot.slane %v4867_v4, 1  ;;  %v2324_v6 = vpop.f32.mrf.mxu2  ;;  %v2142_v24 = vpop.f32.mrf.mxu1 }
 0x22d   : > { %v1484_v42 = vpack.c.bf16 %v1460_v20, %v1460_v20  ;;  %v2325_v2 = vadd.f32 %v2324_v6, %v2251_v1 }
 0x22e   : > { %v2455_v43 = vpop.permute.xlu0 %2454  ;;  %v1262_v22 = vpop.permute.xlu1 %1261  ;;  %v2437_v47 = vsel %vm1173_vm6, %v2434_v19, %v2436_v14 }
 0x22f   : > { %1508 = vst.msk [vmem:[%s3490_s27 + $0x48] sm:$0xf] %vm315_vm3, %v1484_v42  ;;  %v2520_v48 = vadd.f32 %v2455_v43, %v4603_v46  ;;  %v1314_v63 = vadd.f32 %v1262_v22, %v4615_v29  ;;  %2484 = vrot.lane.b32.xlu0 %v2437_v47, %s3438_s30  ;;  %v2253_v25 = vpop.f32.mrf.mxu0  ;;  %v2578_v55 = vrot.slane %v2325_v2, 2 }
 0x231   : > { %v2642_v34 = vadd.f32 %v2577_v45, %v2520_v48  ;;  %v1437_v21 = vadd.f32 %v4668_v60, %v1314_v63  ;;  %v2215_v32 = vpop.f32.mrf.mxu3  ;;  %v2579_v41 = vsel %vm1344_vm7, %v2576_v12, %v2578_v55 }
 0x232   : > { %v4878_v18 = vadd.f32 %v2215_v32, %v2142_v24 }
 0x233   : > { %v2666_v58 = vmax.f32 %v2642_v34, 0.0  ;;  %v1461_v33 = vmax.f32 %v1437_v21, 0.0 }
 0x234   : > { %v2438_v46 = vrot.slane %v4878_v18, 1  ;;  %v2326_v29 = vpop.f32.mrf.mxu2  ;;  %v2145_v13 = vpop.f32.mrf.mxu1 }
 0x235   : > { %v2690_v8 = vpack.c.bf16 %v2666_v58, %v2666_v58  ;;  %v1485_v26 = vpack.c.bf16 %v1461_v33, %v1461_v33  ;;  %v2327_v19 = vadd.f32 %v2326_v29, %v2253_v25 }
 0x236   : > { %v2457_v40 = vpop.permute.xlu1 %2456  ;;  %v2439_v5 = vsel %vm1173_vm6, %v2436_v14, %v2438_v46  ;;  %v1270_v56 = vpop.permute.xlu2 %1269 }
 0x237   : > { %2714 = vst.msk [vmem:[%s3490_s27 + $0x78] sm:$0xf] %vm315_vm3, %v2690_v8  ;;  %v2580_v60 = vrot.slane %v2327_v19, 2  ;;  %v2521_v37 = vadd.f32 %v2457_v40, %v4626_v61  ;;  %2486 = vrot.lane.b32.xlu1 %v2439_v5, %s3438_s30  ;;  %v1318_v54 = vadd.f32 %v1270_v56, %v4704_v39  ;;  %v2256_v10 = vpop.f32.mrf.mxu0 }
 0x238   : > { %1509 = vst.msk [vmem:[%s3490_s27 + $0x4c] sm:$0xf] %vm315_vm3, %v1485_v26 }
 0x239   : > { %v2581_v3 = vsel %vm1344_vm7, %v2578_v55, %v2580_v60  ;;  %v2643_v1 = vadd.f32 %v2579_v41, %v2521_v37  ;;  %v1441_v16 = vadd.f32 %v4743_v50, %v1318_v54  ;;  %v2218_v11 = vpop.f32.mrf.mxu3 }
 0x23a   : > { %v2644_v30 = vadd.f32 %v2581_v3, %v2522_v17  ;;  %v2219_v61 = vadd.f32 %v2218_v11, %v2145_v13 }
 0x23b   : > { %v2667_v20 = vmax.f32 %v2643_v1, 0.0  ;;  %v1465_v14 = vmax.f32 %v1441_v16, 0.0 }
 0x23c   : > { %v2668_v39 = vmax.f32 %v2644_v30, 0.0  ;;  %v2440_v6 = vrot.slane %v2219_v61, 1  ;;  %v2329_v7 = vpop.f32.mrf.mxu2  ;;  %v2147_v24 = vpop.f32.mrf.mxu1 }
 0x23d   : > { %v2691_v42 = vpack.c.bf16 %v2667_v20, %v2667_v20  ;;  %v1489_v35 = vpack.c.bf16 %v1465_v14, %v1465_v14  ;;  %v2330_v48 = vadd.f32 %v2329_v7, %v2256_v10 }
 0x23e   : > { %v2692_v12 = vpack.c.bf16 %v2668_v39, %v2668_v39  ;;  %v1266_v43 = vpop.permute.xlu0 %1265  ;;  %v2441_v22 = vsel %vm1173_vm6, %v2438_v46, %v2440_v6  ;;  %v2465_v5 = vpop.permute.xlu2 %2464 }
 0x23f   : > { %2715 = vst.msk [vmem:[%s3490_s27 + $0x7c] sm:$0xf] %vm315_vm3, %v2691_v42  ;;  %v1316_v50 = vadd.f32 %v1266_v43, %v4663_v49  ;;  %2488 = vrot.lane.b32.xlu2 %v2441_v22, %s3438_s30  ;;  %v2258_v47 = vpop.f32.mrf.mxu0  ;;  %v2582_v45 = vrot.slane %v2330_v48, 2  ;;  %v2525_v17 = vadd.f32 %v2465_v5, %v4711_v52 }
 0x240   : > { %2716 = vst.msk [vmem:[%s3490_s27 + $0x80] sm:$0xf] %vm315_vm3, %v2692_v12 }
 0x241   : > { %1513 = vst.msk [vmem:[%s3490_s27 + $0x5c] sm:$0xf] %vm315_vm3, %v1489_v35  ;;  %v1439_v63 = vadd.f32 %v4709_v44, %v1316_v50  ;;  %v2220_v25 = vpop.f32.mrf.mxu3  ;;  %v2583_v29 = vsel %vm1344_vm7, %v2580_v60, %v2582_v45 }
 0x243   : > { %v1463_v2 = vmax.f32 %v1439_v63, 0.0 }
 0x244   : > { %v2331_v34 = vpop.f32.mrf.mxu2 }
 0x245   : > { %v1487_v21 = vpack.c.bf16 %v1463_v2, %v1463_v2  ;;  %v2332_v46 = vadd.f32 %v2331_v34, %v2258_v47 }
 0x246   : > { %v2461_v32 = vpop.permute.xlu0 %2460  ;;  %v1268_v58 = vpop.permute.xlu1 %1267 }
 0x247   : > { %1511 = vst.msk [vmem:[%s3490_s27 + $0x54] sm:$0xf] %vm315_vm3, %v1487_v21  ;;  %v2523_v49 = vadd.f32 %v2461_v32, %v4670_v0  ;;  %v1317_v33 = vadd.f32 %v1268_v58, %v4682_v9  ;;  %v2261_v55 = vpop.f32.mrf.mxu0  ;;  %v2584_v19 = vrot.slane %v2332_v46, 2 }
 0x249   : > { %v2645_v13 = vadd.f32 %v2583_v29, %v2523_v49  ;;  %v1440_v44 = vadd.f32 %v4728_v36, %v1317_v33  ;;  %v2585_v36 = vsel %vm1344_vm7, %v2582_v45, %v2584_v19 }
 0x24b   : > { %v2669_v8 = vmax.f32 %v2645_v13, 0.0  ;;  %v1464_v26 = vmax.f32 %v1440_v44, 0.0 }
 0x24c   : > { %v2334_v40 = vpop.f32.mrf.mxu2 }
 0x24d   : > { %v2693_v56 = vpack.c.bf16 %v2669_v8, %v2669_v8  ;;  %v1488_v37 = vpack.c.bf16 %v1464_v26, %v1464_v26  ;;  %v2335_v54 = vadd.f32 %v2334_v40, %v2261_v55 }
 0x24e   : > { %v2463_v0 = vpop.permute.xlu1 %2462 }
 0x24f   : > { %2717 = vst.msk [vmem:[%s3490_s27 + $0x84] sm:$0xf] %vm315_vm3, %v2693_v56  ;;  %v2586_v9 = vrot.slane %v2335_v54, 2  ;;  %v2524_v10 = vadd.f32 %v2463_v0, %v4692_v38  ;;  %v2263_v60 = vpop.f32.mrf.mxu0 }
 0x250   : > { %1512 = vst.msk [vmem:[%s3490_s27 + $0x58] sm:$0xf] %vm315_vm3, %v1488_v37 }
 0x251   : > { %v2587_v41 = vsel %vm1344_vm7, %v2584_v19, %v2586_v9  ;;  %v2646_v3 = vadd.f32 %v2585_v36, %v2524_v10  ;;  %v2471_v45 = vpop.permute.xlu2 %2470 }
 0x252   : > { %v2647_v1 = vadd.f32 %v2587_v41, %v2525_v17  ;;  %v2528_v58 = vadd.f32 %v2471_v45, %v4759_v27 }
 0x253   : > { %v2670_v16 = vmax.f32 %v2646_v3, 0.0 }
 0x254   : > { %v2671_v11 = vmax.f32 %v2647_v1, 0.0  ;;  %v2336_v30 = vpop.f32.mrf.mxu2 }
 0x255   : > { %v2694_v61 = vpack.c.bf16 %v2670_v16, %v2670_v16  ;;  %v2337_v20 = vadd.f32 %v2336_v30, %v2263_v60 }
 0x256   : > { %v2695_v14 = vpack.c.bf16 %v2671_v11, %v2671_v11 }
 0x257   : > { %2718 = vst.msk [vmem:[%s3490_s27 + $0x88] sm:$0xf] %vm315_vm3, %v2694_v61  ;;  %v2588_v38 = vrot.slane %v2337_v20, 2  ;;  %v2266_v39 = vpop.f32.mrf.mxu0 }
 0x258   : > { %2719 = vst.msk [vmem:[%s3490_s27 + $0x8c] sm:$0xf] %vm315_vm3, %v2695_v14 }
 0x259   : > { %v2467_v52 = vpop.permute.xlu0 %2466  ;;  %v2589_v6 = vsel %vm1344_vm7, %v2586_v9, %v2588_v38 }
 0x25a   : > { %v2526_v7 = vadd.f32 %v2467_v52, %v4730_v15 }
 0x25c   : > { %v2648_v24 = vadd.f32 %v2589_v6, %v2526_v7  ;;  %v2339_v42 = vpop.f32.mrf.mxu2 }
 0x25d   : > { %v2340_v35 = vadd.f32 %v2339_v42, %v2266_v39 }
 0x25e   : > { %v2672_v12 = vmax.f32 %v2648_v24, 0.0 }
 0x25f   : > { %v2590_v43 = vrot.slane %v2340_v35, 2  ;;  %v2268_v22 = vpop.f32.mrf.mxu0 }
 0x260   : > { %v2696_v50 = vpack.c.bf16 %v2672_v12, %v2672_v12 }
 0x261   : > { %v2469_v47 = vpop.permute.xlu1 %2468  ;;  %v2591_v48 = vsel %vm1344_vm7, %v2588_v38, %v2590_v43 }
 0x262   : > { %2720 = vst.msk [vmem:[%s3490_s27 + $0x90] sm:$0xf] %vm315_vm3, %v2696_v50  ;;  %v2527_v63 = vadd.f32 %v2469_v47, %v4745_v31 }
 0x264   : > { %v2649_v25 = vadd.f32 %v2591_v48, %v2527_v63  ;;  %v2341_v2 = vpop.f32.mrf.mxu2 }
 0x265   : > { %v2342_v15 = vadd.f32 %v2341_v2, %v2268_v22 }
 0x266   : > { %v2673_v34 = vmax.f32 %v2649_v25, 0.0 }
 0x267   : > { %v2592_v21 = vrot.slane %v2342_v15, 2  ;;  %v2271_v32 = vpop.f32.mrf.mxu0 }
 0x268   : > { %v2697_v49 = vpack.c.bf16 %v2673_v34, %v2673_v34 }
 0x269   : > { %v2593_v33 = vsel %vm1344_vm7, %v2590_v43, %v2592_v21  ;;  %v2477_v3 = vpop.permute.xlu2 %2476 }
 0x26a   : > { %2721 = vst.msk [vmem:[%s3490_s27 + $0x94] sm:$0xf] %vm315_vm3, %v2697_v49  ;;  %v2650_v55 = vadd.f32 %v2593_v33, %v2528_v58  ;;  %v2531_v30 = vadd.f32 %v2477_v3, %v4791_v51 }
 0x26c   : > { %v2674_v46 = vmax.f32 %v2650_v55, 0.0  ;;  %v2344_v29 = vpop.f32.mrf.mxu2 }
 0x26d   : > { %v2345_v13 = vadd.f32 %v2344_v29, %v2271_v32 }
 0x26e   : > { %v2698_v31 = vpack.c.bf16 %v2674_v46, %v2674_v46 }
 0x26f   : > { %v2594_v44 = vrot.slane %v2345_v13, 2  ;;  %v2273_v8 = vpop.f32.mrf.mxu0 }
 0x270   : > { %2722 = vst.msk [vmem:[%s3490_s27 + $0x98] sm:$0xf] %vm315_vm3, %v2698_v31 }
 0x271   : > { %v2473_v26 = vpop.permute.xlu0 %2472  ;;  %v2595_v19 = vsel %vm1344_vm7, %v2592_v21, %v2594_v44 }
 0x272   : > { %v2529_v27 = vadd.f32 %v2473_v26, %v4768_v59 }
 0x274   : > { %v2651_v40 = vadd.f32 %v2595_v19, %v2529_v27  ;;  %v2346_v5 = vpop.f32.mrf.mxu2 }
 0x275   : > { %v2347_v56 = vadd.f32 %v2346_v5, %v2273_v8 }
 0x276   : > { %v2675_v37 = vmax.f32 %v2651_v40, 0.0 }
 0x277   : > { %v2596_v54 = vrot.slane %v2347_v56, 2  ;;  %v2276_v0 = vpop.f32.mrf.mxu0 }
 0x278   : > { %v2699_v9 = vpack.c.bf16 %v2675_v37, %v2675_v37 }
 0x279   : > { %v2475_v10 = vpop.permute.xlu1 %2474  ;;  %v2597_v60 = vsel %vm1344_vm7, %v2594_v44, %v2596_v54 }
 0x27a   : > { %2723 = vst.msk [vmem:[%s3490_s27 + $0x9c] sm:$0xf] %vm315_vm3, %v2699_v9  ;;  %v2530_v17 = vadd.f32 %v2475_v10, %v4780_v28 }
 0x27c   : > { %v2652_v36 = vadd.f32 %v2597_v60, %v2530_v17  ;;  %v2349_v41 = vpop.f32.mrf.mxu2 }
 0x27d   : > { %v2350_v59 = vadd.f32 %v2349_v41, %v2276_v0 }
 0x27e   : > { %v2676_v1 = vmax.f32 %v2652_v36, 0.0 }
 0x27f   : > { %v2598_v16 = vrot.slane %v2350_v59, 2  ;;  %v2278_v11 = vpop.f32.mrf.mxu0 }
 0x280   : > { %v2700_v61 = vpack.c.bf16 %v2676_v1, %v2676_v1 }
 0x281   : > { %v2599_v20 = vsel %vm1344_vm7, %v2596_v54, %v2598_v16  ;;  %v2483_v34 = vpop.permute.xlu2 %2482 }
 0x282   : > { %2724 = vst.msk [vmem:[%s3490_s27 + $0xa0] sm:$0xf] %vm315_vm3, %v2700_v61  ;;  %v2653_v14 = vadd.f32 %v2599_v20, %v2531_v30  ;;  %v2534_v49 = vadd.f32 %v2483_v34, %v4836_v62 }
 0x284   : > { %v2677_v38 = vmax.f32 %v2653_v14, 0.0  ;;  %v2351_v39 = vpop.f32.mrf.mxu2 }
 0x285   : > { %v2352_v52 = vadd.f32 %v2351_v39, %v2278_v11 }
 0x286   : > { %v2701_v28 = vpack.c.bf16 %v2677_v38, %v2677_v38 }
 0x287   : > { %v2600_v6 = vrot.slane %v2352_v52, 2  ;;  %v2281_v7 = vpop.f32.mrf.mxu0 }
 0x288   : > { %2725 = vst.msk [vmem:[%s3490_s27 + $0xa4] sm:$0xf] %vm315_vm3, %v2701_v28 }
 0x289   : > { %v2479_v24 = vpop.permute.xlu0 %2478  ;;  %v2601_v42 = vsel %vm1344_vm7, %v2598_v16, %v2600_v6 }
 0x28a   : > { %v2532_v51 = vadd.f32 %v2479_v24, %v4809_v53 }
 0x28c   : > { %v2654_v35 = vadd.f32 %v2601_v42, %v2532_v51  ;;  %v2354_v12 = vpop.f32.mrf.mxu2 }
 0x28d   : > { %v2355_v43 = vadd.f32 %v2354_v12, %v2281_v7 }
 0x28e   : > { %v2678_v22 = vmax.f32 %v2654_v35, 0.0 }
 0x28f   : > { %v2602_v50 = vrot.slane %v2355_v43, 2  ;;  %v2283_v47 = vpop.f32.mrf.mxu0 }
 0x290   : > { %v2702_v48 = vpack.c.bf16 %v2678_v22, %v2678_v22 }
 0x291   : > { %v2481_v63 = vpop.permute.xlu1 %2480  ;;  %v2603_v25 = vsel %vm1344_vm7, %v2600_v6, %v2602_v50 }
 0x292   : > { %2726 = vst.msk [vmem:[%s3490_s27 + $0xa8] sm:$0xf] %vm315_vm3, %v2702_v48  ;;  %v2533_v2 = vadd.f32 %v2481_v63, %v4822_v23 }
 0x294   : > { %v2655_v45 = vadd.f32 %v2603_v25, %v2533_v2  ;;  %v2356_v15 = vpop.f32.mrf.mxu2 }
 0x295   : > { %v2357_v53 = vadd.f32 %v2356_v15, %v2283_v47 }
 0x296   : > { %v2679_v21 = vmax.f32 %v2655_v45, 0.0 }
 0x297   : > { %v2604_v32 = vrot.slane %v2357_v53, 2  ;;  %v2286_v58 = vpop.f32.mrf.mxu0 }
 0x298   : > { %v2703_v33 = vpack.c.bf16 %v2679_v21, %v2679_v21 }
 0x299   : > { %v2605_v55 = vsel %vm1344_vm7, %v2602_v50, %v2604_v32  ;;  %v2489_v41 = vpop.permute.xlu2 %2488 }
 0x29a   : > { %2727 = vst.msk [vmem:[%s3490_s27 + $0xac] sm:$0xf] %vm315_vm3, %v2703_v33  ;;  %v2656_v46 = vadd.f32 %v2605_v55, %v2534_v49  ;;  %v2537_v16 = vadd.f32 %v2489_v41, %v4878_v18 }
 0x29c   : > { %v2680_v29 = vmax.f32 %v2656_v46, 0.0  ;;  %v2359_v13 = vpop.f32.mrf.mxu2 }
 0x29d   : > { %v2360_v31 = vadd.f32 %v2359_v13, %v2286_v58 }
 0x29e   : > { %v2704_v23 = vpack.c.bf16 %v2680_v29, %v2680_v29 }
 0x29f   : > { %v2606_v44 = vrot.slane %v2360_v31, 2  ;;  %v2288_v8 = vpop.f32.mrf.mxu0 }
 0x2a0   : > { %2728 = vst.msk [vmem:[%s3490_s27 + $0xb0] sm:$0xf] %vm315_vm3, %v2704_v23 }
 0x2a1   : > { %v2485_v26 = vpop.permute.xlu0 %2484  ;;  %v2607_v19 = vsel %vm1344_vm7, %v2604_v32, %v2606_v44 }
 0x2a2   : > { %v2535_v62 = vadd.f32 %v2485_v26, %v4851_v57 }
 0x2a4   : > { %v2657_v27 = vadd.f32 %v2607_v19, %v2535_v62  ;;  %v2361_v40 = vpop.f32.mrf.mxu2 }
 0x2a5   : > { %v2362_v5 = vadd.f32 %v2361_v40, %v2288_v8 }
 0x2a6   : > { %v2681_v56 = vmax.f32 %v2657_v27, 0.0 }
 0x2a7   : > { %v2608_v37 = vrot.slane %v2362_v5, 2  ;;  %v2291_v54 = vpop.f32.mrf.mxu0 }
 0x2a8   : > { %v2705_v0 = vpack.c.bf16 %v2681_v56, %v2681_v56 }
 0x2a9   : > { %v2487_v9 = vpop.permute.xlu1 %2486  ;;  %v2609_v10 = vsel %vm1344_vm7, %v2606_v44, %v2608_v37 }
 0x2aa   : > { %2729 = vst.msk [vmem:[%s3490_s27 + $0xb4] sm:$0xf] %vm315_vm3, %v2705_v0  ;;  %v2536_v60 = vadd.f32 %v2487_v9, %v4867_v4 }
 0x2ac   : > { %v2658_v17 = vadd.f32 %v2609_v10, %v2536_v60  ;;  %v2364_v36 = vpop.f32.mrf.mxu2 }
 0x2ad   : > { %v2365_v57 = vadd.f32 %v2364_v36, %v2291_v54 }
 0x2ae   : > { %v2682_v3 = vmax.f32 %v2658_v17, 0.0 }
 0x2af   : > { %v2610_v59 = vrot.slane %v2365_v57, 2  ;;  %v2293_v1 = vpop.f32.mrf.mxu0 }
 0x2b0   : > { %v2706_v11 = vpack.c.bf16 %v2682_v3, %v2682_v3 }
 0x2b1   : > { %v2611_v30 = vsel %vm1344_vm7, %v2608_v37, %v2610_v59 }
 0x2b2   : > { %2730 = vst.msk [vmem:[%s3490_s27 + $0xb8] sm:$0xf] %vm315_vm3, %v2706_v11  ;;  %v2659_v61 = vadd.f32 %v2611_v30, %v2537_v16 }
 0x2b4   : > { %v2683_v20 = vmax.f32 %v2659_v61, 0.0  ;;  %v2366_v14 = vpop.f32.mrf.mxu2 }
 0x2b6   : > { %v2707_v38 = vpack.c.bf16 %v2683_v20, %v2683_v20 }
 0x2b8   : > { %2731 = vst.msk [vmem:[%s3490_s27 + $0xbc] sm:$0xf] %vm315_vm3, %v2707_v38 }
 0x2b9 PF: > { %s13_s14 = sadd.s32 1, %s3435_s14   ;;  %s5042_s12 = smov %s3431_s13 }
 0x2ba   : > { %p10_p6 = scmp.ge.s32.totalorder %s13_s14, 4   ;;  %s5043_s13 = smov %s5045_s15 }
 0x2bc   :  { %12 = sbr.rel (!%p10_p6) target bundleno = 2 (0x2), region = 69 }

</bundles_post_ra>
